<compile_context>
chip_gen: v5e
topology: v5e:2x2
jax: 0.10.0
libtpu: 0.0.40
codegen_flags: <defaults>
</compile_context>

<pallas_src>
import functools
import math

import jax
import jax.numpy as jnp
import numpy as np
from jax import lax
from jax.experimental import pallas as pl
from jax.experimental.pallas import tpu as pltpu


@functools.lru_cache(maxsize=1)
def _vmem_limit_bytes():
    """Generation-aware scoped-VMEM budget: ~3/4 of physical VMEM, capped at
    96 MiB (v5e/v6e: 128 MiB -> 96 MiB; v7x: 64 MiB -> 48 MiB)."""
    try:
        phys = int(pltpu.get_tpu_info().vmem_capacity_bytes)
        return int(max(32 << 20, min(96 << 20, (3 * phys) // 4)))
    except Exception:  # no TPU info available (e.g. interpret mode)
        return 32 << 20


def _tile_dim(dim, target, align):
    """Largest tile <= target that divides `dim` and is a multiple of `align`.
    Falls back to the full dim (block == array extent is always legal)."""
    # TODO(synk): for awkward extents (primes / odd multiples) pad to a tile
    # multiple in the wrapper instead of falling back to one giant block.
    if dim <= target:
        return dim
    t = (target // align) * align
    while t >= align:
        if dim % t == 0:
            return t
        t -= align
    return dim


# --------------------------- tiled linear (MXU) ----------------------------- #

def _linear_kernel(x_ref, w_ref, o_ref, acc_ref):
    @pl.when(pl.program_id(2) == 0)
    def _():
        acc_ref[...] = jnp.zeros_like(acc_ref)

    # bf16 operands, f32 accumulation (casts are no-ops when inputs are bf16).
    acc_ref[...] += jnp.dot(
        x_ref[...].astype(jnp.bfloat16),
        w_ref[...].astype(jnp.bfloat16),
        preferred_element_type=jnp.float32,
    )

    @pl.when(pl.program_id(2) == pl.num_programs(2) - 1)
    def _():
        o_ref[...] = acc_ref[...].astype(o_ref.dtype)


def linear_pallas(x2d, w, *, out_dtype=None, tile_m=512, tile_n=512, tile_k=1024):
    """y = x2d @ w with (tm, tn, tk) tiling and K-axis accumulation."""
    M, K = x2d.shape
    K2, N = w.shape
    assert K == K2
    out_dtype = out_dtype if out_dtype is not None else x2d.dtype
    tm = _tile_dim(M, tile_m, 8)
    tn = _tile_dim(N, tile_n, 128)
    tk = _tile_dim(K, tile_k, 128)
    grid = (M // tm, N // tn, K // tk)
    cost = pl.CostEstimate(
        flops=2 * M * K * N,
        transcendentals=0,
        bytes_accessed=(jnp.dtype(x2d.dtype).itemsize * M * K
                        + jnp.dtype(w.dtype).itemsize * K * N
                        + jnp.dtype(out_dtype).itemsize * M * N),
    )
    return pl.pallas_call(
        _linear_kernel,
        out_shape=jax.ShapeDtypeStruct((M, N), out_dtype),
        grid=grid,
        in_specs=[
            pl.BlockSpec((tm, tk), lambda i, j, k: (i, k)),
            pl.BlockSpec((tk, tn), lambda i, j, k: (k, j)),
        ],
        out_specs=pl.BlockSpec((tm, tn), lambda i, j, k: (i, j)),
        scratch_shapes=[pltpu.VMEM((tm, tn), jnp.float32)],
        compiler_params=pltpu.CompilerParams(
            dimension_semantics=("parallel", "parallel", "arbitrary"),
            vmem_limit_bytes=_vmem_limit_bytes(),
        ),
        cost_estimate=cost,
    )(x2d, w)


# --------------------- flash-style ALiBi attention kernel ------------------- #

def _alibi_flash_kernel(slopes_ref, q_ref, k_ref, v_ref, o_ref,
                        m_sc, l_sc, acc_sc, *, n_head):
    """Grid cell (b, qi, ki): online-softmax update of one q-tile against one
    kv-tile, all heads handled in-kernel (heads folded in the hidden dim)."""
    qi = pl.program_id(1)
    ki = pl.program_id(2)

    tq, D = q_ref.shape
    tk = k_ref.shape[0]
    Dh = D // n_head

    @pl.when(ki == 0)
    def _():
        m_sc[...] = jnp.full(m_sc.shape, -jnp.inf, jnp.float32)
        l_sc[...] = jnp.zeros(l_sc.shape, jnp.float32)
        acc_sc[...] = jnp.zeros(acc_sc.shape, jnp.float32)

    # ALiBi bias for this tile: torch.tril(j - i) == min(j - i, 0).
    rows = qi * tq + lax.broadcasted_iota(jnp.int32, (tq, tk), 0)
    cols = ki * tk + lax.broadcasted_iota(jnp.int32, (tq, tk), 1)
    bias = jnp.minimum(cols - rows, 0).astype(jnp.float32)

    q = q_ref[...].astype(jnp.bfloat16)   # no-ops: q/k/v arrive in bf16
    k = k_ref[...].astype(jnp.bfloat16)
    v = v_ref[...].astype(jnp.bfloat16)

    # Static unroll over heads (n_head is small here).
    # TODO(synk): for large n_head*tq*tk, bound live ranges (fori_loop over
    # heads with 128-aligned lane slices) to avoid vreg spill traffic.
    for h in range(n_head):
        sl = slice(h * Dh, (h + 1) * Dh)
        # (tq, Dh) x (tk, Dh) contracting over Dh -- no materialized k.T.
        s = lax.dot_general(
            q[:, sl], k[:, sl],
            dimension_numbers=(((1,), (1,)), ((), ())),
            preferred_element_type=jnp.float32,
        )                                         # (tq, tk); NB: no /sqrt(d)
        s = s + slopes_ref[h] * bias

        m_prev = m_sc[h]                          # (tq, 1)
        m_new = jnp.maximum(m_prev, jnp.max(s, axis=-1, keepdims=True))
        alpha = jnp.exp(m_prev - m_new)
        # TODO(synk): on v6e/v7x a bf16 exp here ~doubles EUP throughput when
        # head_dim <= 64; kept f32 for accuracy and v5e portability.
        p = jnp.exp(s - m_new)
        l_sc[h] = alpha * l_sc[h] + jnp.sum(p, axis=-1, keepdims=True)
        acc_sc[h] = alpha * acc_sc[h] + jnp.dot(
            p.astype(jnp.bfloat16), v[:, sl], preferred_element_type=jnp.float32)
        m_sc[h] = m_new

    @pl.when(ki == pl.num_programs(2) - 1)
    def _():
        # Per-head direct lane-slice stores: no concatenate, no extra (tq, D)
        # f32 temp, epilogue stays vreg- and store-light.
        for h in range(n_head):
            inv_l = pl.reciprocal(l_sc[h], approx=True)     # EUP slot
            o_ref[:, h * Dh:(h + 1) * Dh] = (acc_sc[h] * inv_l).astype(o_ref.dtype)


def alibi_attn_pallas(q, k, v, slopes, n_head, *, tile_q=512, tile_k=256):
    """q/k/v: (B, S, D) with heads folded in D; returns (B, S, D) in q.dtype."""
    B, S, D = q.shape
    H = n_head
    assert D % H == 0
    Dh = D // H
    tq = _tile_dim(S, tile_q, 128)      # 128-aligned tiles keep scores lane-dense
    tk = _tile_dim(S, tile_k, 128)
    num_q, num_k = S // tq, S // tk
    grid = (B, num_q, num_k)

    itemsize = jnp.dtype(q.dtype).itemsize
    cost = pl.CostEstimate(
        flops=4 * B * S * S * D,                  # QK^T + PV
        transcendentals=B * H * S * S,            # exp
        bytes_accessed=itemsize * B * S * D * (2 + 2 * num_q),
    )

    blk_q = pl.BlockSpec((None, tq, D), lambda b, i, j: (b, i, 0))
    blk_kv = pl.BlockSpec((None, tk, D), lambda b, i, j: (b, j, 0))
    kernel = functools.partial(_alibi_flash_kernel, n_head=H)

    return pl.pallas_call(
        kernel,
        out_shape=jax.ShapeDtypeStruct((B, S, D), q.dtype),
        grid=grid,
        in_specs=[
            pl.BlockSpec(memory_space=pltpu.MemorySpace.SMEM),  # slopes (H,)
            blk_q, blk_kv, blk_kv,
        ],
        out_specs=pl.BlockSpec((None, tq, D), lambda b, i, j: (b, i, 0)),
        scratch_shapes=[
            pltpu.VMEM((H, tq, 1), jnp.float32),    # running row max per head
            pltpu.VMEM((H, tq, 1), jnp.float32),    # running denom per head
            pltpu.VMEM((H, tq, Dh), jnp.float32),   # output accumulator
        ],
        compiler_params=pltpu.CompilerParams(
            dimension_semantics=("parallel", "parallel", "arbitrary"),
            vmem_limit_bytes=_vmem_limit_bytes(),
        ),
        cost_estimate=cost,
    )(slopes, q, k, v)


# ------------------------------- module glue -------------------------------- #

def get_slopes(n_head):
    """Exact port of AliBiAttention.get_slopes (incl. non-power-of-2 heads)."""
    main = 2 ** int(math.log2(n_head))
    m_main = 2.0 ** (-8.0 / main)
    m = m_main ** np.arange(1, 1 + main, dtype=np.float64)
    if main < n_head:
        intra = 2.0 ** (-4.0 / main)
        m = np.concatenate(
            [m, intra ** np.arange(1, 1 + 2 * (n_head - main), 2, dtype=np.float64)]
        )
    return jnp.asarray(m, jnp.float32)


def alibi_attention_forward(x, w_qkv, w_out, slopes, n_head):
    B, S, D = x.shape
    # Weights live in HBM as bf16 (no-op cast if caller already stored bf16).
    w_qkv = w_qkv.astype(jnp.bfloat16)
    w_out = w_out.astype(jnp.bfloat16)

    # QKV projection emits bf16 activations: halves the K/V HBM traffic that
    # the attention grid re-reads S/tq times.  x is cast inside the kernel.
    qkv = linear_pallas(x.reshape(B * S, D), w_qkv,
                        out_dtype=jnp.bfloat16).reshape(B, S, 3 * D)
    q, k, v = jnp.split(qkv, 3, axis=-1)
    # torch: cache is the pre-head-split K, V; cast back to x.dtype for fidelity.
    current_cache = (k.astype(x.dtype), v.astype(x.dtype))

    # Heads stay folded in D: no (B,H,S,Dh) HBM transposes around the kernel.
    attn = alibi_attn_pallas(q, k, v, slopes, n_head)       # (B, S, D) bf16

    # TODO(synk): nn.Dropout(p=0.1) treated as identity (eval / inference mode).
    out = linear_pallas(attn.reshape(B * S, D), w_out,
                        out_dtype=x.dtype).reshape(B, S, D)
    return out, current_cache


# ------------------------ pure-JAX reference (check) ------------------------ #

def _reference(x, w_qkv, w_out, slopes, n_head):
    B, S, D = x.shape
    Dh = D // n_head
    qkv = jnp.einsum("bsd,de->bse", x, w_qkv, precision="highest")
    q, k, v = jnp.split(qkv, 3, axis=-1)
    th = lambda t: t.reshape(B, S, n_head, Dh).transpose(0, 2, 1, 3)
    qh, kh, vh = th(q), th(k), th(v)
    s = jnp.einsum("bhqd,bhkd->bhqk", qh, kh, precision="highest")
    i = jnp.arange(S)[:, None].astype(jnp.float32)
    j = jnp.arange(S)[None, :].astype(jnp.float32)
    bias = jnp.where(j <= i, j - i, 0.0)
    s = s + slopes[None, :, None, None] * bias[None, None]
    p = jax.nn.softmax(s, axis=-1)
    o = jnp.einsum("bhqk,bhkd->bhqd", p, vh, precision="highest")
    o = o.transpose(0, 2, 1, 3).reshape(B, S, D)
    return jnp.einsum("bsd,de->bse", o, w_out, precision="highest"), (k, v)


if __name__ == "__main__":
    B, S, D, H = 2, 8, 32, 4            # batch, seq, hid_dim, n_head -> head_dim = 8

    key = jax.random.PRNGKey(0)
    k1, k2, kx = jax.random.split(key, 3)
    bound = 1.0 / math.sqrt(D)          # nn.Linear default uniform init bound
    w_qkv = jax.random.uniform(k1, (D, 3 * D), jnp.float32, -bound, bound)
    w_out = jax.random.uniform(k2, (D, D), jnp.float32, -bound, bound)
    # Weights stored bf16 in HBM (perf review); reference uses their f32 upcast.
    w_qkv = w_qkv.astype(jnp.bfloat16)
    w_out = w_out.astype(jnp.bfloat16)
    x = jax.random.normal(kx, (B, S, D), dtype=jnp.float32)
    slopes = get_slopes(H)

    fwd = jax.jit(functools.partial(alibi_attention_forward, n_head=H))
    out, (k_cache, v_cache) = fwd(x, w_qkv, w_out, slopes)
    jax.block_until_ready((out, k_cache, v_cache))

    ref_out, (ref_k, ref_v) = _reference(
        x, w_qkv.astype(jnp.float32), w_out.astype(jnp.float32), slopes, H)
    np.testing.assert_allclose(np.asarray(out, np.float32), np.asarray(ref_out),
                               rtol=5e-2, atol=5e-2)
    np.testing.assert_allclose(np.asarray(k_cache, np.float32), np.asarray(ref_k),
                               rtol=5e-2, atol=5e-2)
    np.testing.assert_allclose(np.asarray(v_cache, np.float32), np.asarray(ref_v),
                               rtol=5e-2, atol=5e-2)
    assert out.shape == (B, S, D) and out.dtype == x.dtype
    assert k_cache.shape == (B, S, D) and k_cache.dtype == x.dtype
    print("KERNEL_OK")
</pallas_src>

<mosaic_0001>
module attributes {stable_mosaic.version = 11 : i64} {
  func.func @_linear_kernel(%arg0: i32, %arg1: i32, %arg2: i32, %arg3: memref<16x32xbf16, #tpu.memory_space<vmem>>, %arg4: memref<32x32xbf16, #tpu.memory_space<vmem>>, %arg5: memref<16x32xf32, #tpu.memory_space<vmem>>, %arg6: memref<16x32xf32, #tpu.memory_space<vmem>>) attributes {dimension_semantics = [#tpu.dimension_semantics<parallel>, #tpu.dimension_semantics<parallel>, #tpu.dimension_semantics<arbitrary>], iteration_bounds = array<i64: 1, 1, 1>, scalar_prefetch = 0 : i64, scratch_operands = 1 : i64, tpu.core_type = #tpu.core_type<tc>, window_params = [{transform_indices = @transform_0, window_bounds = array<i64: 16, 32>}, {transform_indices = @transform_1, window_bounds = array<i64: 32, 32>}, {transform_indices = @transform_2, window_bounds = array<i64: 16, 32>}]} {
    %c0_i32 = arith.constant 0 : i32
    %0 = arith.cmpi eq, %arg2, %c0_i32 : i32
    %1 = arith.extui %0 : i1 to i32
    %c0_i32_0 = arith.constant 0 : i32
    %2 = arith.cmpi ne, %1, %c0_i32_0 : i32
    scf.if %2 {
      %cst_10 = arith.constant 0.000000e+00 : f32
      %12 = vector.broadcast %cst_10 : f32 to vector<16x32xf32>
      %c0_11 = arith.constant 0 : index
      %c0_12 = arith.constant 0 : index
      %13 = vector.load %arg6[%c0_11, %c0_12] : memref<16x32xf32, #tpu.memory_space<vmem>>, vector<16x32xf32>
      tpu.vector_store %arg6[%c0_11, %c0_12], %12 {strides = array<i32>} : memref<16x32xf32, #tpu.memory_space<vmem>>, vector<16x32xf32>,
    } else {
    }
    %c0 = arith.constant 0 : index
    %c0_1 = arith.constant 0 : index
    %3 = vector.load %arg6[%c0, %c0_1] : memref<16x32xf32, #tpu.memory_space<vmem>>, vector<16x32xf32>
    %c0_2 = arith.constant 0 : index
    %c0_3 = arith.constant 0 : index
    %4 = vector.load %arg3[%c0_2, %c0_3] : memref<16x32xbf16, #tpu.memory_space<vmem>>, vector<16x32xbf16>
    %c0_4 = arith.constant 0 : index
    %c0_5 = arith.constant 0 : index
    %5 = vector.load %arg4[%c0_4, %c0_5] : memref<32x32xbf16, #tpu.memory_space<vmem>>, vector<32x32xbf16>
    %cst = arith.constant dense<0.000000e+00> : vector<16x32xf32>
    %6 = tpu.matmul %4, %5, %cst {dimension_numbers = #tpu.dot_dimension_numbers<[1], [0], [0], [1], [0, 0, 1, 1], [], []>} : vector<16x32xbf16>, vector<32x32xbf16>, vector<16x32xf32> -> vector<16x32xf32>
    %7 = arith.addf %3, %6 : vector<16x32xf32>
    %c0_6 = arith.constant 0 : index
    %c0_7 = arith.constant 0 : index
    %8 = vector.load %arg6[%c0_6, %c0_7] : memref<16x32xf32, #tpu.memory_space<vmem>>, vector<16x32xf32>
    tpu.vector_store %arg6[%c0_6, %c0_7], %7 {strides = array<i32>} : memref<16x32xf32, #tpu.memory_space<vmem>>, vector<16x32xf32>,
    %c0_i32_8 = arith.constant 0 : i32
    %9 = arith.cmpi eq, %arg2, %c0_i32_8 : i32
    %10 = arith.extui %9 : i1 to i32
    %c0_i32_9 = arith.constant 0 : i32
    %11 = arith.cmpi ne, %10, %c0_i32_9 : i32
    scf.if %11 {
      %c0_10 = arith.constant 0 : index
      %c0_11 = arith.constant 0 : index
      %12 = vector.load %arg6[%c0_10, %c0_11] : memref<16x32xf32, #tpu.memory_space<vmem>>, vector<16x32xf32>
      %c0_12 = arith.constant 0 : index
      %c0_13 = arith.constant 0 : index
      %13 = vector.load %arg5[%c0_12, %c0_13] : memref<16x32xf32, #tpu.memory_space<vmem>>, vector<16x32xf32>
      tpu.vector_store %arg5[%c0_12, %c0_13], %12 {strides = array<i32>} : memref<16x32xf32, #tpu.memory_space<vmem>>, vector<16x32xf32>,
    } else {
    }
    return
  }
  func.func @transform_0(%arg0: i32, %arg1: i32, %arg2: i32) -> (i32, i32) {
    %c0_i32 = arith.constant 0 : i32
    return %arg0, %arg2 : i32, i32
  }
  func.func @transform_1(%arg0: i32, %arg1: i32, %arg2: i32) -> (i32, i32) {
    %c0_i32 = arith.constant 0 : i32
    return %arg2, %arg1 : i32, i32
  }
  func.func @transform_2(%arg0: i32, %arg1: i32, %arg2: i32) -> (i32, i32) {
    %c0_i32 = arith.constant 0 : i32
    return %arg0, %arg1 : i32, i32
  }
}

module attributes {stable_mosaic.version = 11 : i64} {
  func.func @_linear_kernel(%arg0: i32, %arg1: i32, %arg2: i32, %arg3: memref<16x32xf32, #tpu.memory_space<vmem>>, %arg4: memref<32x96xbf16, #tpu.memory_space<vmem>>, %arg5: memref<16x96xbf16, #tpu.memory_space<vmem>>, %arg6: memref<16x96xf32, #tpu.memory_space<vmem>>) attributes {dimension_semantics = [#tpu.dimension_semantics<parallel>, #tpu.dimension_semantics<parallel>, #tpu.dimension_semantics<arbitrary>], iteration_bounds = array<i64: 1, 1, 1>, scalar_prefetch = 0 : i64, scratch_operands = 1 : i64, tpu.core_type = #tpu.core_type<tc>, window_params = [{transform_indices = @transform_0, window_bounds = array<i64: 16, 32>}, {transform_indices = @transform_1, window_bounds = array<i64: 32, 96>}, {transform_indices = @transform_2, window_bounds = array<i64: 16, 96>}]} {
    %c0_i32 = arith.constant 0 : i32
    %0 = arith.cmpi eq, %arg2, %c0_i32 : i32
    %1 = arith.extui %0 : i1 to i32
    %c0_i32_0 = arith.constant 0 : i32
    %2 = arith.cmpi ne, %1, %c0_i32_0 : i32
    scf.if %2 {
      %cst_10 = arith.constant 0.000000e+00 : f32
      %13 = vector.broadcast %cst_10 : f32 to vector<16x96xf32>
      %c0_11 = arith.constant 0 : index
      %c0_12 = arith.constant 0 : index
      %14 = vector.load %arg6[%c0_11, %c0_12] : memref<16x96xf32, #tpu.memory_space<vmem>>, vector<16x96xf32>
      tpu.vector_store %arg6[%c0_11, %c0_12], %13 {strides = array<i32>} : memref<16x96xf32, #tpu.memory_space<vmem>>, vector<16x96xf32>,
    } else {
    }
    %c0 = arith.constant 0 : index
    %c0_1 = arith.constant 0 : index
    %3 = vector.load %arg6[%c0, %c0_1] : memref<16x96xf32, #tpu.memory_space<vmem>>, vector<16x96xf32>
    %c0_2 = arith.constant 0 : index
    %c0_3 = arith.constant 0 : index
    %4 = vector.load %arg3[%c0_2, %c0_3] : memref<16x32xf32, #tpu.memory_space<vmem>>, vector<16x32xf32>
    %5 = arith.truncf %4 : vector<16x32xf32> to vector<16x32xbf16>
    %c0_4 = arith.constant 0 : index
    %c0_5 = arith.constant 0 : index
    %6 = vector.load %arg4[%c0_4, %c0_5] : memref<32x96xbf16, #tpu.memory_space<vmem>>, vector<32x96xbf16>
    %cst = arith.constant dense<0.000000e+00> : vector<16x96xf32>
    %7 = tpu.matmul %5, %6, %cst {dimension_numbers = #tpu.dot_dimension_numbers<[1], [0], [0], [1], [0, 0, 1, 1], [], []>} : vector<16x32xbf16>, vector<32x96xbf16>, vector<16x96xf32> -> vector<16x96xf32>
    %8 = arith.addf %3, %7 : vector<16x96xf32>
    %c0_6 = arith.constant 0 : index
    %c0_7 = arith.constant 0 : index
    %9 = vector.load %arg6[%c0_6, %c0_7] : memref<16x96xf32, #tpu.memory_space<vmem>>, vector<16x96xf32>
    tpu.vector_store %arg6[%c0_6, %c0_7], %8 {strides = array<i32>} : memref<16x96xf32, #tpu.memory_space<vmem>>, vector<16x96xf32>,
    %c0_i32_8 = arith.constant 0 : i32
    %10 = arith.cmpi eq, %arg2, %c0_i32_8 : i32
    %11 = arith.extui %10 : i1 to i32
    %c0_i32_9 = arith.constant 0 : i32
    %12 = arith.cmpi ne, %11, %c0_i32_9 : i32
    scf.if %12 {
      %c0_10 = arith.constant 0 : index
      %c0_11 = arith.constant 0 : index
      %13 = vector.load %arg6[%c0_10, %c0_11] : memref<16x96xf32, #tpu.memory_space<vmem>>, vector<16x96xf32>
      %14 = arith.truncf %13 : vector<16x96xf32> to vector<16x96xbf16>
      %c0_12 = arith.constant 0 : index
      %c0_13 = arith.constant 0 : index
      %15 = vector.load %arg5[%c0_12, %c0_13] : memref<16x96xbf16, #tpu.memory_space<vmem>>, vector<16x96xbf16>
      tpu.vector_store %arg5[%c0_12, %c0_13], %14 {strides = array<i32>} : memref<16x96xbf16, #tpu.memory_space<vmem>>, vector<16x96xbf16>,
    } else {
    }
    return
  }
  func.func @transform_0(%arg0: i32, %arg1: i32, %arg2: i32) -> (i32, i32) {
    %c0_i32 = arith.constant 0 : i32
    return %arg0, %arg2 : i32, i32
  }
  func.func @transform_1(%arg0: i32, %arg1: i32, %arg2: i32) -> (i32, i32) {
    %c0_i32 = arith.constant 0 : i32
    return %arg2, %arg1 : i32, i32
  }
  func.func @transform_2(%arg0: i32, %arg1: i32, %arg2: i32) -> (i32, i32) {
    %c0_i32 = arith.constant 0 : i32
    return %arg0, %arg1 : i32, i32
  }
}

module attributes {stable_mosaic.version = 11 : i64} {
  func.func @_alibi_flash_kernel(%arg0: i32, %arg1: i32, %arg2: i32, %arg3: memref<4xf32, #tpu.memory_space<smem>>, %arg4: memref<1x8x32xbf16, #tpu.memory_space<vmem>>, %arg5: memref<1x8x32xbf16, #tpu.memory_space<vmem>>, %arg6: memref<1x8x32xbf16, #tpu.memory_space<vmem>>, %arg7: memref<1x8x32xbf16, #tpu.memory_space<vmem>>, %arg8: memref<4x8x1xf32, #tpu.memory_space<vmem>>, %arg9: memref<4x8x1xf32, #tpu.memory_space<vmem>>, %arg10: memref<4x8x8xf32, #tpu.memory_space<vmem>>) attributes {dimension_semantics = [#tpu.dimension_semantics<parallel>, #tpu.dimension_semantics<parallel>, #tpu.dimension_semantics<arbitrary>], iteration_bounds = array<i64: 2, 1, 1>, scalar_prefetch = 0 : i64, scratch_operands = 3 : i64, tpu.core_type = #tpu.core_type<tc>, window_params = [{transform_indices = @transform_0, window_bounds = array<i64: 4>}, {transform_indices = @transform_1, window_bounds = array<i64: 1, 8, 32>}, {transform_indices = @transform_2, window_bounds = array<i64: 1, 8, 32>}, {transform_indices = @transform_3, window_bounds = array<i64: 1, 8, 32>}, {transform_indices = @transform_4, window_bounds = array<i64: 1, 8, 32>}]} {
    %c0_i32 = arith.constant 0 : i32
    %0 = arith.cmpi eq, %arg2, %c0_i32 : i32
    %1 = arith.extui %0 : i1 to i32
    %c0_i32_0 = arith.constant 0 : i32
    %2 = arith.cmpi ne, %1, %c0_i32_0 : i32
    scf.if %2 {
      %cst_101 = arith.constant 0xFF800000 : f32
      %184 = vector.broadcast %cst_101 : f32 to vector<4x8x1xf32>
      %c0_102 = arith.constant 0 : index
      %c0_103 = arith.constant 0 : index
      %c0_104 = arith.constant 0 : index
      %185 = vector.load %arg8[%c0_102, %c0_103, %c0_104] : memref<4x8x1xf32, #tpu.memory_space<vmem>>, vector<4x8x1xf32>
      tpu.vector_store %arg8[%c0_102, %c0_103, %c0_104], %184 {strides = array<i32>} : memref<4x8x1xf32, #tpu.memory_space<vmem>>, vector<4x8x1xf32>,
      %cst_105 = arith.constant 0.000000e+00 : f32
      %186 = vector.broadcast %cst_105 : f32 to vector<4x8x1xf32>
      %c0_106 = arith.constant 0 : index
      %c0_107 = arith.constant 0 : index
      %c0_108 = arith.constant 0 : index
      %187 = vector.load %arg9[%c0_106, %c0_107, %c0_108] : memref<4x8x1xf32, #tpu.memory_space<vmem>>, vector<4x8x1xf32>
      tpu.vector_store %arg9[%c0_106, %c0_107, %c0_108], %186 {strides = array<i32>} : memref<4x8x1xf32, #tpu.memory_space<vmem>>, vector<4x8x1xf32>,
      %cst_109 = arith.constant 0.000000e+00 : f32
      %188 = vector.broadcast %cst_109 : f32 to vector<4x8x8xf32>
      %c0_110 = arith.constant 0 : index
      %c0_111 = arith.constant 0 : index
      %c0_112 = arith.constant 0 : index
      %189 = vector.load %arg10[%c0_110, %c0_111, %c0_112] : memref<4x8x8xf32, #tpu.memory_space<vmem>>, vector<4x8x8xf32>
      tpu.vector_store %arg10[%c0_110, %c0_111, %c0_112], %188 {strides = array<i32>} : memref<4x8x8xf32, #tpu.memory_space<vmem>>, vector<4x8x8xf32>,
    } else {
    }
    %c8_i32 = arith.constant 8 : i32
    %3 = arith.muli %arg1, %c8_i32 : i32
    %4 = tpu.iota {dimensions = array<i32: 0>} : vector<8x8xi32>
    %5 = vector.broadcast %3 : i32 to vector<8x8xi32>
    %6 = arith.addi %5, %4 : vector<8x8xi32>
    %c8_i32_1 = arith.constant 8 : i32
    %7 = arith.muli %arg2, %c8_i32_1 : i32
    %8 = tpu.iota {dimensions = array<i32: 1>} : vector<8x8xi32>
    %9 = vector.broadcast %7 : i32 to vector<8x8xi32>
    %10 = arith.addi %9, %8 : vector<8x8xi32>
    %11 = arith.subi %10, %6 : vector<8x8xi32>
    %c0_i32_2 = arith.constant 0 : i32
    %12 = vector.broadcast %c0_i32_2 : i32 to vector<8x8xi32>
    %13 = arith.minsi %11, %12 : vector<8x8xi32>
    %14 = arith.sitofp %13 : vector<8x8xi32> to vector<8x8xf32>
    %c0 = arith.constant 0 : index
    %c0_3 = arith.constant 0 : index
    %c0_4 = arith.constant 0 : index
    %15 = vector.load %arg4[%c0, %c0_3, %c0_4] : memref<1x8x32xbf16, #tpu.memory_space<vmem>>, vector<1x8x32xbf16>
    %16 = vector.shape_cast %15 : vector<1x8x32xbf16> to vector<8x32xbf16>
    %c0_5 = arith.constant 0 : index
    %c0_6 = arith.constant 0 : index
    %c0_7 = arith.constant 0 : index
    %17 = vector.load %arg5[%c0_5, %c0_6, %c0_7] : memref<1x8x32xbf16, #tpu.memory_space<vmem>>, vector<1x8x32xbf16>
    %18 = vector.shape_cast %17 : vector<1x8x32xbf16> to vector<8x32xbf16>
    %c0_8 = arith.constant 0 : index
    %c0_9 = arith.constant 0 : index
    %c0_10 = arith.constant 0 : index
    %19 = vector.load %arg6[%c0_8, %c0_9, %c0_10] : memref<1x8x32xbf16, #tpu.memory_space<vmem>>, vector<1x8x32xbf16>
    %20 = vector.shape_cast %19 : vector<1x8x32xbf16> to vector<8x32xbf16>
    %21 = vector.extract_strided_slice %16 {offsets = [0, 0], sizes = [8, 8], strides = [1, 1]} : vector<8x32xbf16> to vector<8x8xbf16>
    %22 = vector.extract_strided_slice %18 {offsets = [0, 0], sizes = [8, 8], strides = [1, 1]} : vector<8x32xbf16> to vector<8x8xbf16>
    %cst = arith.constant dense<0.000000e+00> : vector<8x8xf32>
    %23 = tpu.matmul %21, %22, %cst {dimension_numbers = #tpu.dot_dimension_numbers<[1], [1], [0], [0], [0, 0, 1, 0], [], []>} : vector<8x8xbf16>, vector<8x8xbf16>, vector<8x8xf32> -> vector<8x8xf32>
    %c0_11 = arith.constant 0 : index
    %24 = memref.load %arg3[%c0_11] : memref<4xf32, #tpu.memory_space<smem>>
    %25 = vector.broadcast %24 : f32 to vector<8x8xf32>
    %26 = arith.mulf %25, %14 : vector<8x8xf32>
    %27 = arith.addf %23, %26 : vector<8x8xf32>
    %c0_12 = arith.constant 0 : index
    %c0_13 = arith.constant 0 : index
    %c0_14 = arith.constant 0 : index
    %28 = vector.load %arg8[%c0_12, %c0_13, %c0_14] : memref<4x8x1xf32, #tpu.memory_space<vmem>>, vector<1x8x1xf32>
    %29 = vector.shape_cast %28 : vector<1x8x1xf32> to vector<8x1xf32>
    %cst_15 = arith.constant dense<0xFF800000> : vector<8xf32>
    %30 = vector.multi_reduction <maximumf>, %27, %cst_15 [1] : vector<8x8xf32> to vector<8xf32>
    %31 = vector.shape_cast %30 : vector<8xf32> to vector<8x1xf32>
    %32 = arith.maximumf %29, %31 : vector<8x1xf32>
    %33 = arith.subf %29, %32 : vector<8x1xf32>
    %34 = math.exp %33 : vector<8x1xf32>
    %35 = vector.broadcast %32 : vector<8x1xf32> to vector<8x8xf32>
    %36 = arith.subf %27, %35 : vector<8x8xf32>
    %37 = math.exp %36 : vector<8x8xf32>
    %c0_16 = arith.constant 0 : index
    %c0_17 = arith.constant 0 : index
    %c0_18 = arith.constant 0 : index
    %38 = vector.load %arg9[%c0_16, %c0_17, %c0_18] : memref<4x8x1xf32, #tpu.memory_space<vmem>>, vector<1x8x1xf32>
    %39 = vector.shape_cast %38 : vector<1x8x1xf32> to vector<8x1xf32>
    %40 = arith.mulf %34, %39 : vector<8x1xf32>
    %cst_19 = arith.constant dense<0.000000e+00> : vector<8xf32>
    %41 = vector.multi_reduction <add>, %37, %cst_19 [1] : vector<8x8xf32> to vector<8xf32>
    %42 = vector.shape_cast %41 : vector<8xf32> to vector<8x1xf32>
    %43 = arith.addf %40, %42 : vector<8x1xf32>
    %c0_20 = arith.constant 0 : index
    %c0_21 = arith.constant 0 : index
    %c0_22 = arith.constant 0 : index
    %44 = vector.load %arg9[%c0_20, %c0_21, %c0_22] : memref<4x8x1xf32, #tpu.memory_space<vmem>>, vector<1x8x1xf32>
    %45 = vector.shape_cast %44 : vector<1x8x1xf32> to vector<8x1xf32>
    %46 = vector.shape_cast %43 : vector<8x1xf32> to vector<1x8x1xf32>
    tpu.vector_store %arg9[%c0_20, %c0_21, %c0_22], %46 {strides = array<i32>} : memref<4x8x1xf32, #tpu.memory_space<vmem>>, vector<1x8x1xf32>,
    %c0_23 = arith.constant 0 : index
    %c0_24 = arith.constant 0 : index
    %c0_25 = arith.constant 0 : index
    %47 = vector.load %arg10[%c0_23, %c0_24, %c0_25] : memref<4x8x8xf32, #tpu.memory_space<vmem>>, vector<1x8x8xf32>
    %48 = vector.shape_cast %47 : vector<1x8x8xf32> to vector<8x8xf32>
    %49 = vector.broadcast %34 : vector<8x1xf32> to vector<8x8xf32>
    %50 = arith.mulf %49, %48 : vector<8x8xf32>
    %51 = arith.truncf %37 : vector<8x8xf32> to vector<8x8xbf16>
    %52 = vector.extract_strided_slice %20 {offsets = [0, 0], sizes = [8, 8], strides = [1, 1]} : vector<8x32xbf16> to vector<8x8xbf16>
    %cst_26 = arith.constant dense<0.000000e+00> : vector<8x8xf32>
    %53 = tpu.matmul %51, %52, %cst_26 {dimension_numbers = #tpu.dot_dimension_numbers<[1], [0], [0], [1], [0, 0, 1, 1], [], []>} : vector<8x8xbf16>, vector<8x8xbf16>, vector<8x8xf32> -> vector<8x8xf32>
    %54 = arith.addf %50, %53 : vector<8x8xf32>
    %c0_27 = arith.constant 0 : index
    %c0_28 = arith.constant 0 : index
    %c0_29 = arith.constant 0 : index
    %55 = vector.load %arg10[%c0_27, %c0_28, %c0_29] : memref<4x8x8xf32, #tpu.memory_space<vmem>>, vector<1x8x8xf32>
    %56 = vector.shape_cast %55 : vector<1x8x8xf32> to vector<8x8xf32>
    %57 = vector.shape_cast %54 : vector<8x8xf32> to vector<1x8x8xf32>
    tpu.vector_store %arg10[%c0_27, %c0_28, %c0_29], %57 {strides = array<i32>} : memref<4x8x8xf32, #tpu.memory_space<vmem>>, vector<1x8x8xf32>,
    %c0_30 = arith.constant 0 : index
    %c0_31 = arith.constant 0 : index
    %c0_32 = arith.constant 0 : index
    %58 = vector.load %arg8[%c0_30, %c0_31, %c0_32] : memref<4x8x1xf32, #tpu.memory_space<vmem>>, vector<1x8x1xf32>
    %59 = vector.shape_cast %58 : vector<1x8x1xf32> to vector<8x1xf32>
    %60 = vector.shape_cast %32 : vector<8x1xf32> to vector<1x8x1xf32>
    tpu.vector_store %arg8[%c0_30, %c0_31, %c0_32], %60 {strides = array<i32>} : memref<4x8x1xf32, #tpu.memory_space<vmem>>, vector<1x8x1xf32>,
    %61 = vector.extract_strided_slice %16 {offsets = [0, 8], sizes = [8, 8], strides = [1, 1]} : vector<8x32xbf16> to vector<8x8xbf16>
    %62 = vector.extract_strided_slice %18 {offsets = [0, 8], sizes = [8, 8], strides = [1, 1]} : vector<8x32xbf16> to vector<8x8xbf16>
    %cst_33 = arith.constant dense<0.000000e+00> : vector<8x8xf32>
    %63 = tpu.matmul %61, %62, %cst_33 {dimension_numbers = #tpu.dot_dimension_numbers<[1], [1], [0], [0], [0, 0, 1, 0], [], []>} : vector<8x8xbf16>, vector<8x8xbf16>, vector<8x8xf32> -> vector<8x8xf32>
    %c1 = arith.constant 1 : index
    %64 = memref.load %arg3[%c1] : memref<4xf32, #tpu.memory_space<smem>>
    %65 = vector.broadcast %64 : f32 to vector<8x8xf32>
    %66 = arith.mulf %65, %14 : vector<8x8xf32>
    %67 = arith.addf %63, %66 : vector<8x8xf32>
    %c1_34 = arith.constant 1 : index
    %c0_35 = arith.constant 0 : index
    %c0_36 = arith.constant 0 : index
    %68 = vector.load %arg8[%c1_34, %c0_35, %c0_36] : memref<4x8x1xf32, #tpu.memory_space<vmem>>, vector<1x8x1xf32>
    %69 = vector.shape_cast %68 : vector<1x8x1xf32> to vector<8x1xf32>
    %cst_37 = arith.constant dense<0xFF800000> : vector<8xf32>
    %70 = vector.multi_reduction <maximumf>, %67, %cst_37 [1] : vector<8x8xf32> to vector<8xf32>
    %71 = vector.shape_cast %70 : vector<8xf32> to vector<8x1xf32>
    %72 = arith.maximumf %69, %71 : vector<8x1xf32>
    %73 = arith.subf %69, %72 : vector<8x1xf32>
    %74 = math.exp %73 : vector<8x1xf32>
    %75 = vector.broadcast %72 : vector<8x1xf32> to vector<8x8xf32>
    %76 = arith.subf %67, %75 : vector<8x8xf32>
    %77 = math.exp %76 : vector<8x8xf32>
    %c1_38 = arith.constant 1 : index
    %c0_39 = arith.constant 0 : index
    %c0_40 = arith.constant 0 : index
    %78 = vector.load %arg9[%c1_38, %c0_39, %c0_40] : memref<4x8x1xf32, #tpu.memory_space<vmem>>, vector<1x8x1xf32>
    %79 = vector.shape_cast %78 : vector<1x8x1xf32> to vector<8x1xf32>
    %80 = arith.mulf %74, %79 : vector<8x1xf32>
    %cst_41 = arith.constant dense<0.000000e+00> : vector<8xf32>
    %81 = vector.multi_reduction <add>, %77, %cst_41 [1] : vector<8x8xf32> to vector<8xf32>
    %82 = vector.shape_cast %81 : vector<8xf32> to vector<8x1xf32>
    %83 = arith.addf %80, %82 : vector<8x1xf32>
    %c1_42 = arith.constant 1 : index
    %c0_43 = arith.constant 0 : index
    %c0_44 = arith.constant 0 : index
    %84 = vector.load %arg9[%c1_42, %c0_43, %c0_44] : memref<4x8x1xf32, #tpu.memory_space<vmem>>, vector<1x8x1xf32>
    %85 = vector.shape_cast %84 : vector<1x8x1xf32> to vector<8x1xf32>
    %86 = vector.shape_cast %83 : vector<8x1xf32> to vector<1x8x1xf32>
    tpu.vector_store %arg9[%c1_42, %c0_43, %c0_44], %86 {strides = array<i32>} : memref<4x8x1xf32, #tpu.memory_space<vmem>>, vector<1x8x1xf32>,
    %c1_45 = arith.constant 1 : index
    %c0_46 = arith.constant 0 : index
    %c0_47 = arith.constant 0 : index
    %87 = vector.load %arg10[%c1_45, %c0_46, %c0_47] : memref<4x8x8xf32, #tpu.memory_space<vmem>>, vector<1x8x8xf32>
    %88 = vector.shape_cast %87 : vector<1x8x8xf32> to vector<8x8xf32>
    %89 = vector.broadcast %74 : vector<8x1xf32> to vector<8x8xf32>
    %90 = arith.mulf %89, %88 : vector<8x8xf32>
    %91 = arith.truncf %77 : vector<8x8xf32> to vector<8x8xbf16>
    %92 = vector.extract_strided_slice %20 {offsets = [0, 8], sizes = [8, 8], strides = [1, 1]} : vector<8x32xbf16> to vector<8x8xbf16>
    %cst_48 = arith.constant dense<0.000000e+00> : vector<8x8xf32>
    %93 = tpu.matmul %91, %92, %cst_48 {dimension_numbers = #tpu.dot_dimension_numbers<[1], [0], [0], [1], [0, 0, 1, 1], [], []>} : vector<8x8xbf16>, vector<8x8xbf16>, vector<8x8xf32> -> vector<8x8xf32>
    %94 = arith.addf %90, %93 : vector<8x8xf32>
    %c1_49 = arith.constant 1 : index
    %c0_50 = arith.constant 0 : index
    %c0_51 = arith.constant 0 : index
    %95 = vector.load %arg10[%c1_49, %c0_50, %c0_51] : memref<4x8x8xf32, #tpu.memory_space<vmem>>, vector<1x8x8xf32>
    %96 = vector.shape_cast %95 : vector<1x8x8xf32> to vector<8x8xf32>
    %97 = vector.shape_cast %94 : vector<8x8xf32> to vector<1x8x8xf32>
    tpu.vector_store %arg10[%c1_49, %c0_50, %c0_51], %97 {strides = array<i32>} : memref<4x8x8xf32, #tpu.memory_space<vmem>>, vector<1x8x8xf32>,
    %c1_52 = arith.constant 1 : index
    %c0_53 = arith.constant 0 : index
    %c0_54 = arith.constant 0 : index
    %98 = vector.load %arg8[%c1_52, %c0_53, %c0_54] : memref<4x8x1xf32, #tpu.memory_space<vmem>>, vector<1x8x1xf32>
    %99 = vector.shape_cast %98 : vector<1x8x1xf32> to vector<8x1xf32>
    %100 = vector.shape_cast %72 : vector<8x1xf32> to vector<1x8x1xf32>
    tpu.vector_store %arg8[%c1_52, %c0_53, %c0_54], %100 {strides = array<i32>} : memref<4x8x1xf32, #tpu.memory_space<vmem>>, vector<1x8x1xf32>,
    %101 = vector.extract_strided_slice %16 {offsets = [0, 16], sizes = [8, 8], strides = [1, 1]} : vector<8x32xbf16> to vector<8x8xbf16>
    %102 = vector.extract_strided_slice %18 {offsets = [0, 16], sizes = [8, 8], strides = [1, 1]} : vector<8x32xbf16> to vector<8x8xbf16>
    %cst_55 = arith.constant dense<0.000000e+00> : vector<8x8xf32>
    %103 = tpu.matmul %101, %102, %cst_55 {dimension_numbers = #tpu.dot_dimension_numbers<[1], [1], [0], [0], [0, 0, 1, 0], [], []>} : vector<8x8xbf16>, vector<8x8xbf16>, vector<8x8xf32> -> vector<8x8xf32>
    %c2 = arith.constant 2 : index
    %104 = memref.load %arg3[%c2] : memref<4xf32, #tpu.memory_space<smem>>
    %105 = vector.broadcast %104 : f32 to vector<8x8xf32>
    %106 = arith.mulf %105, %14 : vector<8x8xf32>
    %107 = arith.addf %103, %106 : vector<8x8xf32>
    %c2_56 = arith.constant 2 : index
    %c0_57 = arith.constant 0 : index
    %c0_58 = arith.constant 0 : index
    %108 = vector.load %arg8[%c2_56, %c0_57, %c0_58] : memref<4x8x1xf32, #tpu.memory_space<vmem>>, vector<1x8x1xf32>
    %109 = vector.shape_cast %108 : vector<1x8x1xf32> to vector<8x1xf32>
    %cst_59 = arith.constant dense<0xFF800000> : vector<8xf32>
    %110 = vector.multi_reduction <maximumf>, %107, %cst_59 [1] : vector<8x8xf32> to vector<8xf32>
    %111 = vector.shape_cast %110 : vector<8xf32> to vector<8x1xf32>
    %112 = arith.maximumf %109, %111 : vector<8x1xf32>
    %113 = arith.subf %109, %112 : vector<8x1xf32>
    %114 = math.exp %113 : vector<8x1xf32>
    %115 = vector.broadcast %112 : vector<8x1xf32> to vector<8x8xf32>
    %116 = arith.subf %107, %115 : vector<8x8xf32>
    %117 = math.exp %116 : vector<8x8xf32>
    %c2_60 = arith.constant 2 : index
    %c0_61 = arith.constant 0 : index
    %c0_62 = arith.constant 0 : index
    %118 = vector.load %arg9[%c2_60, %c0_61, %c0_62] : memref<4x8x1xf32, #tpu.memory_space<vmem>>, vector<1x8x1xf32>
    %119 = vector.shape_cast %118 : vector<1x8x1xf32> to vector<8x1xf32>
    %120 = arith.mulf %114, %119 : vector<8x1xf32>
    %cst_63 = arith.constant dense<0.000000e+00> : vector<8xf32>
    %121 = vector.multi_reduction <add>, %117, %cst_63 [1] : vector<8x8xf32> to vector<8xf32>
    %122 = vector.shape_cast %121 : vector<8xf32> to vector<8x1xf32>
    %123 = arith.addf %120, %122 : vector<8x1xf32>
    %c2_64 = arith.constant 2 : index
    %c0_65 = arith.constant 0 : index
    %c0_66 = arith.constant 0 : index
    %124 = vector.load %arg9[%c2_64, %c0_65, %c0_66] : memref<4x8x1xf32, #tpu.memory_space<vmem>>, vector<1x8x1xf32>
    %125 = vector.shape_cast %124 : vector<1x8x1xf32> to vector<8x1xf32>
    %126 = vector.shape_cast %123 : vector<8x1xf32> to vector<1x8x1xf32>
    tpu.vector_store %arg9[%c2_64, %c0_65, %c0_66], %126 {strides = array<i32>} : memref<4x8x1xf32, #tpu.memory_space<vmem>>, vector<1x8x1xf32>,
    %c2_67 = arith.constant 2 : index
    %c0_68 = arith.constant 0 : index
    %c0_69 = arith.constant 0 : index
    %127 = vector.load %arg10[%c2_67, %c0_68, %c0_69] : memref<4x8x8xf32, #tpu.memory_space<vmem>>, vector<1x8x8xf32>
    %128 = vector.shape_cast %127 : vector<1x8x8xf32> to vector<8x8xf32>
    %129 = vector.broadcast %114 : vector<8x1xf32> to vector<8x8xf32>
    %130 = arith.mulf %129, %128 : vector<8x8xf32>
    %131 = arith.truncf %117 : vector<8x8xf32> to vector<8x8xbf16>
    %132 = vector.extract_strided_slice %20 {offsets = [0, 16], sizes = [8, 8], strides = [1, 1]} : vector<8x32xbf16> to vector<8x8xbf16>
    %cst_70 = arith.constant dense<0.000000e+00> : vector<8x8xf32>
    %133 = tpu.matmul %131, %132, %cst_70 {dimension_numbers = #tpu.dot_dimension_numbers<[1], [0], [0], [1], [0, 0, 1, 1], [], []>} : vector<8x8xbf16>, vector<8x8xbf16>, vector<8x8xf32> -> vector<8x8xf32>
    %134 = arith.addf %130, %133 : vector<8x8xf32>
    %c2_71 = arith.constant 2 : index
    %c0_72 = arith.constant 0 : index
    %c0_73 = arith.constant 0 : index
    %135 = vector.load %arg10[%c2_71, %c0_72, %c0_73] : memref<4x8x8xf32, #tpu.memory_space<vmem>>, vector<1x8x8xf32>
    %136 = vector.shape_cast %135 : vector<1x8x8xf32> to vector<8x8xf32>
    %137 = vector.shape_cast %134 : vector<8x8xf32> to vector<1x8x8xf32>
    tpu.vector_store %arg10[%c2_71, %c0_72, %c0_73], %137 {strides = array<i32>} : memref<4x8x8xf32, #tpu.memory_space<vmem>>, vector<1x8x8xf32>,
    %c2_74 = arith.constant 2 : index
    %c0_75 = arith.constant 0 : index
    %c0_76 = arith.constant 0 : index
    %138 = vector.load %arg8[%c2_74, %c0_75, %c0_76] : memref<4x8x1xf32, #tpu.memory_space<vmem>>, vector<1x8x1xf32>
    %139 = vector.shape_cast %138 : vector<1x8x1xf32> to vector<8x1xf32>
    %140 = vector.shape_cast %112 : vector<8x1xf32> to vector<1x8x1xf32>
    tpu.vector_store %arg8[%c2_74, %c0_75, %c0_76], %140 {strides = array<i32>} : memref<4x8x1xf32, #tpu.memory_space<vmem>>, vector<1x8x1xf32>,
    %141 = vector.extract_strided_slice %16 {offsets = [0, 24], sizes = [8, 8], strides = [1, 1]} : vector<8x32xbf16> to vector<8x8xbf16>
    %142 = vector.extract_strided_slice %18 {offsets = [0, 24], sizes = [8, 8], strides = [1, 1]} : vector<8x32xbf16> to vector<8x8xbf16>
    %cst_77 = arith.constant dense<0.000000e+00> : vector<8x8xf32>
    %143 = tpu.matmul %141, %142, %cst_77 {dimension_numbers = #tpu.dot_dimension_numbers<[1], [1], [0], [0], [0, 0, 1, 0], [], []>} : vector<8x8xbf16>, vector<8x8xbf16>, vector<8x8xf32> -> vector<8x8xf32>
    %c3 = arith.constant 3 : index
    %144 = memref.load %arg3[%c3] : memref<4xf32, #tpu.memory_space<smem>>
    %145 = vector.broadcast %144 : f32 to vector<8x8xf32>
    %146 = arith.mulf %145, %14 : vector<8x8xf32>
    %147 = arith.addf %143, %146 : vector<8x8xf32>
    %c3_78 = arith.constant 3 : index
    %c0_79 = arith.constant 0 : index
    %c0_80 = arith.constant 0 : index
    %148 = vector.load %arg8[%c3_78, %c0_79, %c0_80] : memref<4x8x1xf32, #tpu.memory_space<vmem>>, vector<1x8x1xf32>
    %149 = vector.shape_cast %148 : vector<1x8x1xf32> to vector<8x1xf32>
    %cst_81 = arith.constant dense<0xFF800000> : vector<8xf32>
    %150 = vector.multi_reduction <maximumf>, %147, %cst_81 [1] : vector<8x8xf32> to vector<8xf32>
    %151 = vector.shape_cast %150 : vector<8xf32> to vector<8x1xf32>
    %152 = arith.maximumf %149, %151 : vector<8x1xf32>
    %153 = arith.subf %149, %152 : vector<8x1xf32>
    %154 = math.exp %153 : vector<8x1xf32>
    %155 = vector.broadcast %152 : vector<8x1xf32> to vector<8x8xf32>
    %156 = arith.subf %147, %155 : vector<8x8xf32>
    %157 = math.exp %156 : vector<8x8xf32>
    %c3_82 = arith.constant 3 : index
    %c0_83 = arith.constant 0 : index
    %c0_84 = arith.constant 0 : index
    %158 = vector.load %arg9[%c3_82, %c0_83, %c0_84] : memref<4x8x1xf32, #tpu.memory_space<vmem>>, vector<1x8x1xf32>
    %159 = vector.shape_cast %158 : vector<1x8x1xf32> to vector<8x1xf32>
    %160 = arith.mulf %154, %159 : vector<8x1xf32>
    %cst_85 = arith.constant dense<0.000000e+00> : vector<8xf32>
    %161 = vector.multi_reduction <add>, %157, %cst_85 [1] : vector<8x8xf32> to vector<8xf32>
    %162 = vector.shape_cast %161 : vector<8xf32> to vector<8x1xf32>
    %163 = arith.addf %160, %162 : vector<8x1xf32>
    %c3_86 = arith.constant 3 : index
    %c0_87 = arith.constant 0 : index
    %c0_88 = arith.constant 0 : index
    %164 = vector.load %arg9[%c3_86, %c0_87, %c0_88] : memref<4x8x1xf32, #tpu.memory_space<vmem>>, vector<1x8x1xf32>
    %165 = vector.shape_cast %164 : vector<1x8x1xf32> to vector<8x1xf32>
    %166 = vector.shape_cast %163 : vector<8x1xf32> to vector<1x8x1xf32>
    tpu.vector_store %arg9[%c3_86, %c0_87, %c0_88], %166 {strides = array<i32>} : memref<4x8x1xf32, #tpu.memory_space<vmem>>, vector<1x8x1xf32>,
    %c3_89 = arith.constant 3 : index
    %c0_90 = arith.constant 0 : index
    %c0_91 = arith.constant 0 : index
    %167 = vector.load %arg10[%c3_89, %c0_90, %c0_91] : memref<4x8x8xf32, #tpu.memory_space<vmem>>, vector<1x8x8xf32>
    %168 = vector.shape_cast %167 : vector<1x8x8xf32> to vector<8x8xf32>
    %169 = vector.broadcast %154 : vector<8x1xf32> to vector<8x8xf32>
    %170 = arith.mulf %169, %168 : vector<8x8xf32>
    %171 = arith.truncf %157 : vector<8x8xf32> to vector<8x8xbf16>
    %172 = vector.extract_strided_slice %20 {offsets = [0, 24], sizes = [8, 8], strides = [1, 1]} : vector<8x32xbf16> to vector<8x8xbf16>
    %cst_92 = arith.constant dense<0.000000e+00> : vector<8x8xf32>
    %173 = tpu.matmul %171, %172, %cst_92 {dimension_numbers = #tpu.dot_dimension_numbers<[1], [0], [0], [1], [0, 0, 1, 1], [], []>} : vector<8x8xbf16>, vector<8x8xbf16>, vector<8x8xf32> -> vector<8x8xf32>
    %174 = arith.addf %170, %173 : vector<8x8xf32>
    %c3_93 = arith.constant 3 : index
    %c0_94 = arith.constant 0 : index
    %c0_95 = arith.constant 0 : index
    %175 = vector.load %arg10[%c3_93, %c0_94, %c0_95] : memref<4x8x8xf32, #tpu.memory_space<vmem>>, vector<1x8x8xf32>
    %176 = vector.shape_cast %175 : vector<1x8x8xf32> to vector<8x8xf32>
    %177 = vector.shape_cast %174 : vector<8x8xf32> to vector<1x8x8xf32>
    tpu.vector_store %arg10[%c3_93, %c0_94, %c0_95], %177 {strides = array<i32>} : memref<4x8x8xf32, #tpu.memory_space<vmem>>, vector<1x8x8xf32>,
    %c3_96 = arith.constant 3 : index
    %c0_97 = arith.constant 0 : index
    %c0_98 = arith.constant 0 : index
    %178 = vector.load %arg8[%c3_96, %c0_97, %c0_98] : memref<4x8x1xf32, #tpu.memory_space<vmem>>, vector<1x8x1xf32>
    %179 = vector.shape_cast %178 : vector<1x8x1xf32> to vector<8x1xf32>
    %180 = vector.shape_cast %152 : vector<8x1xf32> to vector<1x8x1xf32>
    tpu.vector_store %arg8[%c3_96, %c0_97, %c0_98], %180 {strides = array<i32>} : memref<4x8x1xf32, #tpu.memory_space<vmem>>, vector<1x8x1xf32>,
    %c0_i32_99 = arith.constant 0 : i32
    %181 = arith.cmpi eq, %arg2, %c0_i32_99 : i32
    %182 = arith.extui %181 : i1 to i32
    %c0_i32_100 = arith.constant 0 : i32
    %183 = arith.cmpi ne, %182, %c0_i32_100 : i32
    scf.if %183 {
      %c0_101 = arith.constant 0 : index
      %c0_102 = arith.constant 0 : index
      %c0_103 = arith.constant 0 : index
      %184 = vector.load %arg9[%c0_101, %c0_102, %c0_103] : memref<4x8x1xf32, #tpu.memory_space<vmem>>, vector<1x8x1xf32>
      %185 = vector.shape_cast %184 : vector<1x8x1xf32> to vector<8x1xf32>
      %186 = tpu.reciprocal %185 {approx = true} : vector<8x1xf32> -> vector<8x1xf32>
      %c0_104 = arith.constant 0 : index
      %c0_105 = arith.constant 0 : index
      %c0_106 = arith.constant 0 : index
      %187 = vector.load %arg10[%c0_104, %c0_105, %c0_106] : memref<4x8x8xf32, #tpu.memory_space<vmem>>, vector<1x8x8xf32>
      %188 = vector.shape_cast %187 : vector<1x8x8xf32> to vector<8x8xf32>
      %189 = vector.broadcast %186 : vector<8x1xf32> to vector<8x8xf32>
      %190 = arith.mulf %188, %189 : vector<8x8xf32>
      %191 = arith.truncf %190 : vector<8x8xf32> to vector<8x8xbf16>
      %c0_107 = arith.constant 0 : index
      %c0_108 = arith.constant 0 : index
      %c0_109 = arith.constant 0 : index
      %192 = vector.load %arg7[%c0_107, %c0_108, %c0_109] : memref<1x8x32xbf16, #tpu.memory_space<vmem>>, vector<1x8x8xbf16>
      %193 = vector.shape_cast %192 : vector<1x8x8xbf16> to vector<8x8xbf16>
      %194 = vector.shape_cast %191 : vector<8x8xbf16> to vector<1x8x8xbf16>
      tpu.vector_store %arg7[%c0_107, %c0_108, %c0_109], %194 {strides = array<i32>} : memref<1x8x32xbf16, #tpu.memory_space<vmem>>, vector<1x8x8xbf16>,
      %c1_110 = arith.constant 1 : index
      %c0_111 = arith.constant 0 : index
      %c0_112 = arith.constant 0 : index
      %195 = vector.load %arg9[%c1_110, %c0_111, %c0_112] : memref<4x8x1xf32, #tpu.memory_space<vmem>>, vector<1x8x1xf32>
      %196 = vector.shape_cast %195 : vector<1x8x1xf32> to vector<8x1xf32>
      %197 = tpu.reciprocal %196 {approx = true} : vector<8x1xf32> -> vector<8x1xf32>
      %c1_113 = arith.constant 1 : index
      %c0_114 = arith.constant 0 : index
      %c0_115 = arith.constant 0 : index
      %198 = vector.load %arg10[%c1_113, %c0_114, %c0_115] : memref<4x8x8xf32, #tpu.memory_space<vmem>>, vector<1x8x8xf32>
      %199 = vector.shape_cast %198 : vector<1x8x8xf32> to vector<8x8xf32>
      %200 = vector.broadcast %197 : vector<8x1xf32> to vector<8x8xf32>
      %201 = arith.mulf %199, %200 : vector<8x8xf32>
      %202 = arith.truncf %201 : vector<8x8xf32> to vector<8x8xbf16>
      %c0_116 = arith.constant 0 : index
      %c0_117 = arith.constant 0 : index
      %c8 = arith.constant 8 : index
      %203 = vector.load %arg7[%c0_116, %c0_117, %c8] : memref<1x8x32xbf16, #tpu.memory_space<vmem>>, vector<1x8x8xbf16>
      %204 = vector.shape_cast %203 : vector<1x8x8xbf16> to vector<8x8xbf16>
      %205 = vector.shape_cast %202 : vector<8x8xbf16> to vector<1x8x8xbf16>
      tpu.vector_store %arg7[%c0_116, %c0_117, %c8], %205 {strides = array<i32>} : memref<1x8x32xbf16, #tpu.memory_space<vmem>>, vector<1x8x8xbf16>,
      %c2_118 = arith.constant 2 : index
      %c0_119 = arith.constant 0 : index
      %c0_120 = arith.constant 0 : index
      %206 = vector.load %arg9[%c2_118, %c0_119, %c0_120] : memref<4x8x1xf32, #tpu.memory_space<vmem>>, vector<1x8x1xf32>
      %207 = vector.shape_cast %206 : vector<1x8x1xf32> to vector<8x1xf32>
      %208 = tpu.reciprocal %207 {approx = true} : vector<8x1xf32> -> vector<8x1xf32>
      %c2_121 = arith.constant 2 : index
      %c0_122 = arith.constant 0 : index
      %c0_123 = arith.constant 0 : index
      %209 = vector.load %arg10[%c2_121, %c0_122, %c0_123] : memref<4x8x8xf32, #tpu.memory_space<vmem>>, vector<1x8x8xf32>
      %210 = vector.shape_cast %209 : vector<1x8x8xf32> to vector<8x8xf32>
      %211 = vector.broadcast %208 : vector<8x1xf32> to vector<8x8xf32>
      %212 = arith.mulf %210, %211 : vector<8x8xf32>
      %213 = arith.truncf %212 : vector<8x8xf32> to vector<8x8xbf16>
      %c0_124 = arith.constant 0 : index
      %c0_125 = arith.constant 0 : index
      %c16 = arith.constant 16 : index
      %214 = vector.load %arg7[%c0_124, %c0_125, %c16] : memref<1x8x32xbf16, #tpu.memory_space<vmem>>, vector<1x8x8xbf16>
      %215 = vector.shape_cast %214 : vector<1x8x8xbf16> to vector<8x8xbf16>
      %216 = vector.shape_cast %213 : vector<8x8xbf16> to vector<1x8x8xbf16>
      tpu.vector_store %arg7[%c0_124, %c0_125, %c16], %216 {strides = array<i32>} : memref<1x8x32xbf16, #tpu.memory_space<vmem>>, vector<1x8x8xbf16>,
      %c3_126 = arith.constant 3 : index
      %c0_127 = arith.constant 0 : index
      %c0_128 = arith.constant 0 : index
      %217 = vector.load %arg9[%c3_126, %c0_127, %c0_128] : memref<4x8x1xf32, #tpu.memory_space<vmem>>, vector<1x8x1xf32>
      %218 = vector.shape_cast %217 : vector<1x8x1xf32> to vector<8x1xf32>
      %219 = tpu.reciprocal %218 {approx = true} : vector<8x1xf32> -> vector<8x1xf32>
      %c3_129 = arith.constant 3 : index
      %c0_130 = arith.constant 0 : index
      %c0_131 = arith.constant 0 : index
      %220 = vector.load %arg10[%c3_129, %c0_130, %c0_131] : memref<4x8x8xf32, #tpu.memory_space<vmem>>, vector<1x8x8xf32>
      %221 = vector.shape_cast %220 : vector<1x8x8xf32> to vector<8x8xf32>
      %222 = vector.broadcast %219 : vector<8x1xf32> to vector<8x8xf32>
      %223 = arith.mulf %221, %222 : vector<8x8xf32>
      %224 = arith.truncf %223 : vector<8x8xf32> to vector<8x8xbf16>
      %c0_132 = arith.constant 0 : index
      %c0_133 = arith.constant 0 : index
      %c24 = arith.constant 24 : index
      %225 = vector.load %arg7[%c0_132, %c0_133, %c24] : memref<1x8x32xbf16, #tpu.memory_space<vmem>>, vector<1x8x8xbf16>
      %226 = vector.shape_cast %225 : vector<1x8x8xbf16> to vector<8x8xbf16>
      %227 = vector.shape_cast %224 : vector<8x8xbf16> to vector<1x8x8xbf16>
      tpu.vector_store %arg7[%c0_132, %c0_133, %c24], %227 {strides = array<i32>} : memref<1x8x32xbf16, #tpu.memory_space<vmem>>, vector<1x8x8xbf16>,
    } else {
    }
    return
  }
  func.func @transform_0(%arg0: i32, %arg1: i32, %arg2: i32) -> i32 {
    %c0_i32 = arith.constant 0 : i32
    %c0_i32_0 = arith.constant 0 : i32
    return %c0_i32 : i32
  }
  func.func @transform_1(%arg0: i32, %arg1: i32, %arg2: i32) -> (i32, i32, i32) {
    %c0_i32 = arith.constant 0 : i32
    %c0_i32_0 = arith.constant 0 : i32
    return %arg0, %arg1, %c0_i32 : i32, i32, i32
  }
  func.func @transform_2(%arg0: i32, %arg1: i32, %arg2: i32) -> (i32, i32, i32) {
    %c0_i32 = arith.constant 0 : i32
    %c0_i32_0 = arith.constant 0 : i32
    return %arg0, %arg2, %c0_i32 : i32, i32, i32
  }
  func.func @transform_3(%arg0: i32, %arg1: i32, %arg2: i32) -> (i32, i32, i32) {
    %c0_i32 = arith.constant 0 : i32
    %c0_i32_0 = arith.constant 0 : i32
    return %arg0, %arg2, %c0_i32 : i32, i32, i32
  }
  func.func @transform_4(%arg0: i32, %arg1: i32, %arg2: i32) -> (i32, i32, i32) {
    %c0_i32 = arith.constant 0 : i32
    %c0_i32_0 = arith.constant 0 : i32
    return %arg0, %arg1, %c0_i32 : i32, i32, i32
  }
}

</mosaic_0001>

<bundles_post_ra>
// kernel: alibi_attention_forward.5
= control target key start
LH: loop header
LB: loop body
LE: loop exit
PB: predicated region body
PF: predicated region fallthrough
CT: control target
= control target key end

     0   :  { %vm17_vm0 = vcmask 261120   ;;  %v138_v1 = vmov 0.0   ;;  %s176_s0 = inlined_call_operand.vmem [shape: bf16[16,32], index: 0, kind: input, shape index: {}]   ;;  %s177_s1 = inlined_call_operand.vmem [shape: bf16[32,32], index: 1, kind: input, shape index: {}]   ;;  %s178_s2 = inlined_call_operand.hbm [shape: f32[16,32], index: 2, kind: output, shape index: {}]  }
   0x1   :  { %v107_v0 = vld [vmem:[%s177_s1 + $0x8] sm:$0xff]  ;;  %18 = vst.msk [vmem:[#allocation2] sm:$0xff] %vm17_vm0, %v138_v1 }
   0x2   :  { %7 = vsyncpa [#allocation4], 0  ;;  %55 = vmatpush.bf16.msra.mxu0 %v107_v0  ;;  %v106_v2 = vld [vmem:[%s177_s1] sm:$0xff]  ;;  %19 = vst.msk [vmem:[#allocation2 + $0x8] sm:$0xff] %vm17_vm0, %v138_v1  ;;  %s139_s1 = smov [#allocation3]   ;;  %s80_s17 = sshll.u32 %s178_s2, 4  ;;  %s81_s17 = int_to_ptr.hbm [resolvable:$true] %s80_s17 }
   0x3   :  { %v105_v3 = vld [vmem:[%s176_s0] sm:$0xff]  ;;  %s78_s15 = sshll.u32 %s139_s1, 4  ;;  %s140_s18 = smov 128   ;;  %s79_s15 = int_to_ptr.vmem [resolvable:$true] %s78_s15 }
   0x4   :  { %s141_s19 = smov 8  }
   0x6   :  { %56 = vmatpush.bf16.msra.mxu0 %v106_v2 }
   0x8   :  { %v20_v4 = vld [vmem:[#allocation2] sm:$0xff] }
   0x9   :  { %104 = vmatmul.msk.bf16.vlgmr.msra.gmra.mxu0 %vm17_vm0, %v105_v3  ;;  %v21_v7 = vld [vmem:[#allocation2 + $0x8] sm:$0xff] }
  0x86   :  { %v58_v5 = vpop.f32.mrf.mxu0 }
  0x87   :  { %v63_v6 = vadd.f32 %v58_v5, %v20_v4 }
  0x89   :  { %65 = vst.msk [vmem:[#allocation2] sm:$0xff] %vm17_vm0, %v63_v6 }
  0x8e   :  { %v60_v8 = vpop.f32.mrf.mxu0 }
  0x8f   :  { %v64_v9 = vadd.f32 %v60_v8, %v21_v7 }
  0x90   :  { %v70_v10 = vld [vmem:[#allocation2] sm:$0xff] }
  0x91   :  { %66 = vst.msk [vmem:[#allocation2 + $0x8] sm:$0xff] %vm17_vm0, %v64_v9 }
  0x92   :  { %72 = vst.msk [vmem:[#allocation3] sm:$0xff] %vm17_vm0, %v70_v10 }
  0x98   :  { %v71_v11 = vld [vmem:[#allocation2 + $0x8] sm:$0xff] }
  0x99   :  { %73 = vst.msk [vmem:[#allocation3 + $0x8] sm:$0xff] %vm17_vm0, %v71_v11 }
  0x9a   :  { %86 = dma.vmem_to_hbm [thread:$0]  %s79_s15, 256, %s81_s17, [#allocation4], %s140_s18, %s140_s18, %s141_s19  }
  0x9b   :  { %136 = dma.done.wait [#allocation4], 256  }
  0x9c   :  { %137 = vsyncadd [#allocation4], 4294967040 }
  0x9d   :  { %91 = vsyncpa [#allocation4], 1 }

// kernel: alibi_attention_forward.3
= control target key start
LH: loop header
LB: loop body
LE: loop exit
PB: predicated region body
PF: predicated region fallthrough
CT: control target
= control target key end

     0   :  { %7 = vsyncpa [#allocation4], 0  ;;  %s219_s0 = inlined_call_operand.hbm [shape: f32[16,32], index: 0, kind: input, shape index: {}]   ;;  %s220_s1 = inlined_call_operand.hbm [shape: bf16[32,96], index: 1, kind: input, shape index: {}]   ;;  %s221_s2 = inlined_call_operand.vmem [shape: bf16[16,96], index: 2, kind: output, shape index: {}]  }
   0x1   :  { %s13_s11 = sshll.u32 %s219_s0, 4  ;;  %s14_s11 = int_to_ptr.hbm [resolvable:$true] %s13_s11 }
   0x2   :  { %8 = vsyncpa [#allocation6], 0  ;;  %s181_s12 = smov [#allocation3]   ;;  %s26_s16 = sshll.u32 %s220_s1, 4  ;;  %s27_s16 = int_to_ptr.hbm [resolvable:$true] %s26_s16 }
   0x3   :  { %s15_s13 = sshll.u32 %s181_s12, 4  ;;  %s182_s17 = smov 128   ;;  %s16_s13 = int_to_ptr.vmem [resolvable:$true] %s15_s13 }
   0x4   :  { %s183_s18 = smov 8   ;;  %s184_s19 = smov [#allocation5]  }
   0x5   :  { %21 = dma.hbm_to_vmem [thread:$0]  %s14_s11, 256, %s16_s13, [#allocation4], %s182_s17, %s182_s17, %s183_s18  }
   0x6   :  { %s28_s20 = sshll.u32 %s184_s19, 4  ;;  %s185_s21 = smov 64   ;;  %s29_s20 = int_to_ptr.vmem [resolvable:$true] %s28_s20 }
   0x7   :  { %s186_s22 = smov 4  }
   0x8   :  { %34 = dma.hbm_to_vmem [thread:$0]  %s27_s16, 256, %s29_s20, [#allocation6], %s185_s21, %s185_s21, %s186_s22  }
   0x9   :  { %177 = dma.done.wait [#allocation4], 256  }
   0xa   :  { %178 = vsyncadd [#allocation4], 4294967040 }
   0xb   :  { %179 = dma.done.wait [#allocation6], 256  }
   0xc   :  { %180 = vsyncadd [#allocation6], 4294967040  ;;  %vm48_vm0 = vcmask 785408   ;;  %v187_v0 = vmov 0.0   ;;  %v121_v1 = vld [vmem:[#allocation5 + $0x8] sm:$0xff]  ;;  %v120_v2 = vld [vmem:[#allocation5] sm:$0xff] }
   0xd   :  { %49 = vst.msk [vmem:[#allocation2] sm:$0xff] %vm48_vm0, %v187_v0  ;;  %82 = vmatpush.bf16.msra.mxu0 %v121_v1  ;;  %v53_v3 = vld [vmem:[#allocation3] sm:$0xff]  ;;  %v54_v4 = vld [vmem:[#allocation3 + $0x8] sm:$0xff]  ;;  %vm72_vm1 = vcmask 261120   ;;  %vm102_vm2 = vcmask 781312  }
   0xe   :  { %50 = vst.msk [vmem:[#allocation2 + $0x8] sm:$0xff] %vm48_vm0, %v187_v0  ;;  %v55_v5 = vpack.c.bf16 %v54_v4, %v53_v3 }
  0x11   :  { %83 = vmatpush.bf16.msra.mxu0 %v120_v2 }
  0x14   :  { %119 = vmatmul.msk.bf16.vlgmr.msra.gmra.mxu0 %vm72_vm1, %v55_v5  ;;  %v51_v6 = vld [vmem:[#allocation2] sm:$0xff] }
  0x15   :  { %v52_v9 = vld [vmem:[#allocation2 + $0x8] sm:$0xff] }
  0x91   :  { %v85_v7 = vpop.f32.mrf.mxu0 }
  0x92   :  { %v90_v8 = vadd.f32 %v85_v7, %v51_v6 }
  0x94   :  { %93 = vst.msk [vmem:[#allocation2] sm:$0xff] %vm48_vm0, %v90_v8 }
  0x99   :  { %v87_v10 = vpop.f32.mrf.mxu0 }
  0x9a   :  { %v91_v11 = vadd.f32 %v87_v10, %v52_v9 }
  0x9b   :  { %v98_v12 = vld [vmem:[#allocation2] sm:$0xff] }
  0x9c   :  { %v100_v13 = vpack.c.bf16 %v98_v12, %v98_v12  ;;  %94 = vst.msk [vmem:[#allocation2 + $0x8] sm:$0xff] %vm48_vm0, %v91_v11 }
  0x9e   :  { %103 = vst.msk [vmem:[%s221_s2] sm:$0xf] %vm102_vm2, %v100_v13 }
  0xa3   :  { %v99_v14 = vld [vmem:[#allocation2 + $0x8] sm:$0xff] }
  0xa4   :  { %v101_v15 = vpack.c.bf16 %v99_v14, %v99_v14 }
  0xa6   :  { %104 = vst.msk [vmem:[%s221_s2 + $0x4] sm:$0xf] %vm102_vm2, %v101_v15 }
  0xa7   :  { %109 = vsyncpa [#allocation4], 1 }
  0xa8   :  { %110 = vsyncpa [#allocation6], 1 }

// kernel: alibi_attention_forward.4
= control target key start
LH: loop header
LB: loop body
LE: loop exit
PB: predicated region body
PF: predicated region fallthrough
CT: control target
= control target key end

     0   :  { %9 = vsyncpa [#allocation6], 0  ;;  %s1034_s15 = smov 0   ;;  %s1036_s16 = smov 0   ;;  %s1175_s0 = inlined_call_operand.vmem [shape: f32[4], index: 0, kind: input, shape index: {}]   ;;  %s1176_s1 = inlined_call_operand.vmem [shape: bf16[2,8,32], index: 1, kind: input, shape index: {}]   ;;  %s1177_s2 = inlined_call_operand.vmem [shape: bf16[2,8,32], index: 2, kind: input, shape index: {}]   ;;  %s1178_s3 = inlined_call_operand.vmem [shape: bf16[2,8,32], index: 3, kind: input, shape index: {}]   ;;  %s1179_s4 = inlined_call_operand.vmem [shape: bf16[2,8,32], index: 4, kind: output, shape index: {}]  }
   0x1   :  { %s1038_s17 = smov 0  }
   0x2 LB: > { %s859_s18 = sadd.s32 4294967295, %s997_s17   ;;  %s34_s19 = sadd.s32 1, %s993_s16  ;;  %s997_s17 = sphi %s1038_s17, %s15_s17   ;;  %s993_s16 = sphi %s1036_s16, %s1181_s16   ;;  %s989_s15 = sphi %s1034_s15, %s1180_s15  }
   0x3   : > { %p36_p0 = scmp.ge.s32.totalorder %s34_s19, 2  ;;  %p861_p1 = scmp.ge.s32.totalorder %s997_s17, 1 }
   0x4   : > { %p172_p2 = scmp.lt.s32.totalorder %s997_s17, 3  ;;  %p893_p4 = scmp.eq.s32.totalorder %s859_s18, 0 }
   0x5   : > { %s1183_s19 = smov (%p36_p0, %s34_s19), 0  ;;  %s184_s22 = sshll.u32 %s1175_s0, 4  ;;  %s185_s22 = int_to_ptr.vmem [resolvable:$true] %s184_s22 }
   0x6   : > { %p173_p3 = pnand %p861_p1, %p172_p2  ;;  %s999_s23 = smov [#allocation5]  }
   0x8   : > { %p889_p5 = pneg %p173_p3  ;;  %227 = sbr.rel (%p173_p3) target bundleno = 1140 (0x474), region = 36 }
   0xa   : > { %p890_p6 = pnand %p893_p4, %p889_p5 }
   0xc   : > { %892 = dma.vmem_to_smem (!%p890_p6), %s185_s22, 16, %s999_s23, [#allocation6]  }
   0xd   : > { %984 = dma.done.wait (%p893_p4), [#allocation6], 16  }
   0xe   : > { %986 = vsyncadd (%p893_p4), [#allocation6], 4294967280 }
   0xf   : > { %234 = sfence }
  0x10   : > { %p273_p7 = scmp.lt.s32.totalorder %s989_s15, 1  ;;  %vm315_vm0 = vcmask 64512   ;;  %vm306_vm1 = vcmask 7168   ;;  %v1000_v3 = vmov -inf   ;;  %v321_v4 = vlaneseq  ;;  %s337_s5 = sld [smem:[#allocation5]] }
  0x11   : > { %307 = vst.msk [vmem:[#allocation2] sm:$0xff] %vm306_vm1, %v1000_v3  ;;  %s1001_s6 = smov 112   ;;  %s1002_s7 = smov 104   ;;  %v1004_v20 = vmov 0   ;;  %v1005_v21 = vmov 0.0   ;;  %vm395_vm3 = vcmask 1043456  }
  0x12   : > { %s1185_s15 = smov (!%p273_p7, %s989_s15), 1  ;;  %308 = vst.msk [vmem:[#allocation2 + $0x8] sm:$0xff] %vm306_vm1, %v1000_v3  ;;  %v322_v5 = vshrl.u32 %v321_v4, 7  ;;  %v327_v6 = vand.u32 127, %v321_v4  ;;  %s1003_s8 = smov 120   ;;  %929 = vset.pattern.permute.xlu1 %v1004_v20  ;;  %930 = vset.pattern.permute.xlu2 %v1004_v20  ;;  %vm689_vm4 = vcmask 60416  }
  0x13   : > { %s1056_s24 = sshll.u32 %s1185_s15, 2  ;;  %309 = vst.msk [vmem:[#allocation2 + $0x10] sm:$0xff] %vm306_vm1, %v1000_v3  ;;  %931 = vset.pattern.permute.xlu0 %v1004_v20  ;;  %s880_s12 = sld [smem:[#allocation5 + $0x3]]  ;;  %vm705_vm5 = vcmask 126016   ;;  %vm721_vm6 = vcmask 191616   ;;  %vm737_vm7 = vcmask 257216  }
  0x14   : > { %s286_s27 = scalar_lea.vmem %s1177_s2, %s1056_s24  ;;  %s279_s30 = scalar_lea.vmem %s1176_s1, %s1056_s24  ;;  %310 = vst.msk [vmem:[#allocation2 + $0x18] sm:$0xff] %vm306_vm1, %v1000_v3  ;;  %v330_v7 = vsub.s32 %v327_v6, %v322_v5 }
  0x15   : > { %v335_v0 = vld [vmem:[%s286_s27] sm:$0xf]  ;;  %311 = vst.msk [vmem:[#allocation3] sm:$0xff] %vm306_vm1, %v1005_v21  ;;  %s293_s11 = scalar_lea.vmem %s1178_s3, %s1056_s24  ;;  %s874_s13 = sld [smem:[#allocation5 + $0x1]] }
  0x16   : > { %v345_v1 = vsel %vm315_vm0, %v335_v0, 0  ;;  %v334_v2 = vld [vmem:[%s279_s30] sm:$0xf]  ;;  %v870_v8 = vcvt.s32.f32 %v330_v7  ;;  %vm331_vm2 = vcmp.lt.s32.totalorder %v330_v7, 0  ;;  %v338_v10 = vstv %s337_s5  ;;  %312 = vst.msk [vmem:[#allocation3 + $0x8] sm:$0xff] %vm306_vm1, %v1005_v21  ;;  %s877_s14 = sld [smem:[#allocation5 + $0x2]]  ;;  %s1159_s20 = scalar_lea.vmem %s1179_s4, %s1056_s24 }
  0x17   : > { %354 = vmatpush.bf16.xpose.msra.mxu0 %v345_v1  ;;  %v424_v11 = vunpack.c.l.b16 %v335_v0  ;;  %v419_v18 = vunpack.c.l.b16 %v334_v2  ;;  %313 = vst.msk [vmem:[#allocation3 + $0x10] sm:$0xff] %vm306_vm1, %v1005_v21  ;;  %v336_v29 = vld [vmem:[%s293_s11] sm:$0xf]  ;;  %s1006_s21 = smov 8   ;;  %s1007_s22 = smov 24  }
  0x18   : > { %v1072_v9 = vsel %vm331_vm2, %v870_v8, 0.0  ;;  %314 = vst.msk [vmem:[#allocation3 + $0x18] sm:$0xff] %vm306_vm1, %v1005_v21  ;;  %v1088_v22 = vld [vmem:[#allocation2] sm:$0xff]  ;;  %v397_v30 = vsel %vm395_vm3, %v336_v29, 0  ;;  %v482_v61 = vunpack.c.l.b16 %v336_v29  ;;  %s1008_s23 = smov 16  }
  0x19   : > { %v339_v12 = vmul.f32 %v1072_v9, %v338_v10  ;;  %v425_v14 = vpack.c.b16 %v424_v11, %v424_v11  ;;  %v420_v19 = vpack.c.b16 %v419_v18, %v419_v18  ;;  %316 = vst.msk [vmem:[#allocation4] sm:$0xff] %vm315_vm0, %v1005_v21  ;;  %406 = vmatpush.bf16.msra.mxu1 %v397_v30  ;;  %v593_v42 = vstv %s880_s12  ;;  %v448_v5 = vld [vmem:[#allocation2 + $0x8] sm:$0xff] }
  0x1a   : > { %317 = vst.msk [vmem:[#allocation4 + $0x8] sm:$0xff] %vm315_vm0, %v1005_v21  ;;  %v594_v43 = vmul.f32 %v1072_v9, %v593_v42  ;;  %v483_v63 = vpack.c.b16 %v482_v61, %v482_v61  ;;  %v535_v8 = vld [vmem:[#allocation2 + $0x10] sm:$0xff] }
  0x1b   : > { %513 = vrot.lane.b32.xlu2 %v425_v14, %s1001_s6  ;;  %318 = vst.msk [vmem:[#allocation4 + $0x10] sm:$0xff] %vm315_vm0, %v1005_v21  ;;  %v416_v48 = vstv %s874_s13  ;;  %v619_v1 = vld [vmem:[#allocation2 + $0x18] sm:$0xff] }
  0x1c   : > { %319 = vst.msk [vmem:[#allocation4 + $0x18] sm:$0xff] %vm315_vm0, %v1005_v21  ;;  %v417_v49 = vmul.f32 %v1072_v9, %v416_v48  ;;  %v509_v56 = vstv %s877_s14 }
  0x1d   : > { %v510_v57 = vmul.f32 %v1072_v9, %v509_v56 }
  0x1e   : > { %872 = vmatmul.msk.bf16.vlgmr.msra.gmra.mxu0 %vm315_vm0, %v334_v2 }
  0x23   : > { %597 = vrot.lane.b32.xlu2 %v425_v14, %s1002_s7 }
  0x2b   : > { %595 = vrot.lane.b32.xlu2 %v420_v19, %s1002_s7 }
  0x75   : > { %v514_v28 = vpop.permute.xlu2 %513 }
  0x76   : > { %v519_v31 = vsel %vm315_vm0, %v514_v28, 0 }
  0x77   : > { %528 = vmatpush.bf16.xpose.msrb.mxu1 %v519_v31 }
  0x7d   : > { %v598_v32 = vpop.permute.xlu2 %597 }
  0x7e   : > { %v603_v33 = vsel %vm315_vm0, %v598_v32, 0 }
  0x7f   : > { %612 = vmatpush.bf16.xpose.msrb.mxu0 %v603_v33 }
  0x85   : > { %v596_v34 = vpop.permute.xlu2 %595 }
  0x86   : > { %881 = vmatmul.msk.bf16.vlgmr.msrb.gmra.mxu0 %vm315_vm0, %v596_v34 }
  0x9b   : > { %v356_v13 = vpop.f32.mrf.mxu0 }
  0x9c   : > { %v357_v15 = vadd.f32 %v356_v13, %v339_v12 }
  0x9e   : > { %v361_v16 = vsel %vm315_vm0, %v357_v15, -inf }
  0x9f   : > { %362 = vmax.xlane.f32.xlu0 %v361_v16 }
  0xa3   : > { %v358_v17 = vpop.f32.mrf.mxu0 }
  0xb3   : > { %426 = vrot.lane.b32.xlu0 %v425_v14, %s1003_s8 }
 0x103   : > { %v614_v44 = vpop.f32.mrf.mxu0 }
 0x104   : > { %v1113_v45 = vadd.f32 %v614_v44, %v594_v43 }
 0x106   : > { %v620_v46 = vsel %vm315_vm0, %v1113_v45, -inf }
 0x107   : > { %621 = vmax.xlane.f32.xlu0 %v620_v46 }
 0x10b   : > { %v616_v47 = vpop.f32.mrf.mxu0 }
 0x112   : > { %v363_v23 = vpop.xlane.xlu0 %362 }
 0x113   : > { %v1091_v24 = vmax.f32 %v1088_v22, %v363_v23 }
 0x115   : > { %v365_v25 = vsub.f32 %v1088_v22, %v1091_v24  ;;  %414 = vst.msk [vmem:[#allocation2] sm:$0xff] %vm306_vm1, %v1091_v24  ;;  %370 = vperm.xlu1 %929, %v1091_v24  }
 0x117   : > { %v366_v10 = vmul.f32 1.442695, %v365_v25 }
 0x11d   : > { %421 = vrot.lane.b32.xlu1 %v420_v19, %s1003_s8 }
 0x125   : > { %511 = vrot.lane.b32.xlu1 %v420_v19, %s1001_s6  ;;  %v427_v26 = vpop.permute.xlu0 %426  ;;  %v376_v19 = vld [vmem:[#allocation3] sm:$0xff] }
 0x126   : > { %v432_v27 = vsel %vm315_vm0, %v427_v26, 0 }
 0x127   : > { %441 = vmatpush.bf16.xpose.msra.mxu2 %v432_v27 }
 0x17a   : > { %v622_v2 = vpop.xlane.xlu0 %621 }
 0x17b   : > { %v623_v3 = vmax.f32 %v619_v1, %v622_v2 }
 0x17d   : > { %v624_v4 = vsub.f32 %v619_v1, %v623_v3  ;;  %675 = vst.msk [vmem:[#allocation2 + $0x18] sm:$0xff] %vm306_vm1, %v623_v3 }
 0x187   : > { %v371_v35 = vpop.permute.xlu1 %370 }
 0x188   : > { %v373_v36 = vsub.f32 %v357_v15, %v371_v35 }
 0x18a   : > { %v374_v37 = vmul.f32 1.442695, %v373_v36 }
 0x18c   : > { %932 = vpow2.f32 %v374_v37 }
 0x18d   : > { %934 = vpow2.f32 %v366_v10 }
 0x18f   : > { %v422_v38 = vpop.permute.xlu1 %421 }
 0x190   : > { %875 = vmatmul.msk.bf16.vlgmr.msra.gmra.mxu2 %vm315_vm0, %v422_v38 }
 0x192   : > { %v933_v39 = vpop.eup %932 }
 0x193   : > { %v391_v40 = vpack.c.bf16 %v933_v39, %v933_v39  ;;  %v378_v0 = vsel %vm315_vm0, %v933_v39, 0.0  ;;  %v935_v15 = vpop.eup %934  ;;  %v625_v39 = vmul.f32 1.442695, %v624_v4 }
 0x194   : > { %v377_v21 = vmul.f32 %v935_v15, %v376_v19 }
 0x195   : > { %873 = vmatmul.msk.bf16.vlgmr.msra.gmra.mxu1 %vm315_vm0, %v391_v40  ;;  %v384_v40 = vld [vmem:[#allocation4] sm:$0xff] }
 0x197   : > { %v512_v41 = vpop.permute.xlu1 %511 }
 0x1a5   : > { %878 = vmatmul.msk.bf16.vlgmr.msrb.gmra.mxu1 %vm315_vm0, %v512_v41 }
 0x212   : > { %v1118_v50 = vpop.f32.mrf.mxu1 }
 0x213   : > { %v443_v51 = vpop.f32.mrf.mxu2 }
 0x214   : > { %v444_v52 = vadd.f32 %v443_v51, %v417_v49 }
 0x216   : > { %v449_v53 = vsel %vm315_vm0, %v444_v52, -inf }
 0x217   : > { %450 = vmax.xlane.f32.xlu1 %v449_v53 }
 0x21a   : > { %v410_v54 = vpop.f32.mrf.mxu1 }
 0x21b   : > { %v445_v55 = vpop.f32.mrf.mxu2 }
 0x21c   : > { %v465_v55 = vld [vmem:[#allocation3 + $0x8] sm:$0xff] }
 0x222   : > { %v530_v58 = vpop.f32.mrf.mxu1 }
 0x223   : > { %v1122_v59 = vadd.f32 %v530_v58, %v510_v57 }
 0x225   : > { %v536_v60 = vsel %vm315_vm0, %v1122_v59, -inf }
 0x226   : > { %537 = vmax.xlane.f32.xlu2 %v536_v60 }
 0x22a   : > { %v532_v62 = vpop.f32.mrf.mxu1 }
 0x230   : > { %484 = vrot.lane.b32.xlu1 %v483_v63, %s1003_s8 }
 0x238   : > { %568 = vrot.lane.b32.xlu1 %v483_v63, %s1001_s6 }
 0x262   : > { %379 = vadd.xlane.f32.xlu1 %v378_v0  ;;  %v473_v0 = vld [vmem:[#allocation4 + $0x8] sm:$0xff] }
 0x28a   : > { %v451_v6 = vpop.xlane.xlu1 %450 }
 0x28b   : > { %v452_v7 = vmax.f32 %v448_v5, %v451_v6 }
 0x28d   : > { %507 = vst.msk [vmem:[#allocation2 + $0x8] sm:$0xff] %vm306_vm1, %v452_v7  ;;  %458 = vperm.xlu2 %930, %v452_v7   ;;  %v453_v13 = vsub.f32 %v448_v5, %v452_v7  ;;  %v644_v7 = vld [vmem:[#allocation4 + $0x18] sm:$0xff] }
 0x28f   : > { %v454_v14 = vmul.f32 1.442695, %v453_v13 }
 0x291   : > { %936 = vpow2.f32 %v454_v14 }
 0x295   : > { %629 = vperm.xlu2 %930, %v623_v3  }
 0x297   : > { %v937_v16 = vpop.eup %936 }
 0x298   : > { %v466_v56 = vmul.f32 %v937_v16, %v465_v55 }
 0x299   : > { %v538_v9 = vpop.xlane.xlu2 %537 }
 0x29a   : > { %v539_v11 = vmax.f32 %v535_v8, %v538_v9 }
 0x29c   : > { %v540_v12 = vsub.f32 %v535_v8, %v539_v11  ;;  %591 = vst.msk [vmem:[#allocation2 + $0x10] sm:$0xff] %vm306_vm1, %v539_v11  ;;  %545 = vperm.xlu0 %931, %v539_v11  }
 0x29d   : > { %652 = vrot.lane.b32.xlu2 %v483_v63, %s1002_s7 }
 0x2a2   : > { %v485_v17 = vpop.permute.xlu1 %484 }
 0x2a3   : > { %v490_v20 = vsel %vm395_vm3, %v485_v17, 0 }
 0x2a4   : > { %499 = vmatpush.bf16.msra.mxu3 %v490_v20 }
 0x2a5   : > { %387 = vperm.xlu2 %930, %v935_v15   ;;  %v552_v15 = vld [vmem:[#allocation3 + $0x10] sm:$0xff] }
 0x2aa   : > { %v569_v18 = vpop.permute.xlu1 %568 }
 0x2ab   : > { %v574_v33 = vsel %vm395_vm3, %v569_v18, 0 }
 0x2ac   : > { %583 = vmatpush.bf16.msrb.mxu3 %v574_v33 }
 0x2ad   : > { %476 = vperm.xlu2 %930, %v937_v16  }
 0x2d5   : > { %v380_v22 = vpop.xlane.xlu1 %379 }
 0x2d6   : > { %v381_v23 = vadd.f32 %v380_v22, %v377_v21 }
 0x2d8   : > { %383 = vst.msk [vmem:[#allocation3] sm:$0xff] %vm306_vm1, %v381_v23 }
 0x2e7   : > { %v459_v24 = vpop.permute.xlu2 %458 }
 0x2e8   : > { %v461_v25 = vsub.f32 %v444_v52, %v459_v24  ;;  %v560_v24 = vld [vmem:[#allocation4 + $0x10] sm:$0xff] }
 0x2ea   : > { %v462_v26 = vmul.f32 1.442695, %v461_v25 }
 0x2ec   : > { %938 = vpow2.f32 %v462_v26 }
 0x2ef   : > { %v630_v27 = vpop.permute.xlu2 %629 }
 0x2f0   : > { %v632_v28 = vsub.f32 %v1113_v45, %v630_v27  ;;  %v541_v45 = vmul.f32 1.442695, %v540_v12 }
 0x2f2   : > { %v939_v29 = vpop.eup %938  ;;  %v633_v30 = vmul.f32 1.442695, %v632_v28 }
 0x2f3   : > { %v467_v31 = vsel %vm315_vm0, %v939_v29, 0.0  ;;  %v480_v32 = vpack.c.bf16 %v939_v29, %v939_v29 }
 0x2f4   : > { %940 = vpow2.f32 %v633_v30  ;;  %468 = vadd.xlane.f32.xlu0 %v467_v31 }
 0x2f5   : > { %876 = vmatmul.msk.bf16.vlgmr.msra.gmra.mxu3 %vm315_vm0, %v480_v32  ;;  %942 = vpow2.f32 %v625_v39 }
 0x2f6   : > { %944 = vpow2.f32 %v541_v45 }
 0x2f7   : > { %v653_v34 = vpop.permute.xlu2 %652 }
 0x2f8   : > { %v658_v35 = vsel %vm395_vm3, %v653_v34, 0 }
 0x2f9   : > { %667 = vmatpush.bf16.msrb.mxu2 %v658_v35 }
 0x2fa   : > { %v941_v36 = vpop.eup %940 }
 0x2fb   : > { %v638_v37 = vsel %vm315_vm0, %v941_v36, 0.0  ;;  %v651_v38 = vpack.c.bf16 %v941_v36, %v941_v36  ;;  %v943_v44 = vpop.eup %942 }
 0x2fc   : > { %639 = vadd.xlane.f32.xlu1 %v638_v37  ;;  %v945_v49 = vpop.eup %944 }
 0x2fd   : > { %882 = vmatmul.msk.bf16.vlgmr.msrb.gmra.mxu2 %vm315_vm0, %v651_v38  ;;  %v553_v16 = vmul.f32 %v945_v49, %v552_v15 }
 0x2ff   : > { %v388_v41 = vpop.permute.xlu2 %387 }
 0x300   : > { %v390_v42 = vmul.f32 %v388_v41, %v384_v40 }
 0x302   : > { %v412_v43 = vadd.f32 %v1118_v50, %v390_v42  ;;  %v679_v50 = vld [vmem:[#allocation3] sm:$0xff] }
 0x304   : > { %413 = vst.msk [vmem:[#allocation4] sm:$0xff] %vm315_vm0, %v412_v43 }
 0x307   : > { %v477_v1 = vpop.permute.xlu2 %476 }
 0x308   : > { %647 = vperm.xlu0 %931, %v943_v44   ;;  %v479_v2 = vmul.f32 %v477_v1, %v473_v0 }
 0x30b   : > { %v681_v19 = vld [vmem:[#allocation4] sm:$0xff] }
 0x30e   : > { %v546_v46 = vpop.permute.xlu0 %545 }
 0x30f   : > { %v548_v47 = vsub.f32 %v1122_v59, %v546_v46  ;;  %v636_v59 = vld [vmem:[#allocation3 + $0x18] sm:$0xff] }
 0x310   : > { %v637_v60 = vmul.f32 %v943_v44, %v636_v59 }
 0x311   : > { %v549_v48 = vmul.f32 1.442695, %v548_v47 }
 0x313   : > { %946 = vpow2.f32 %v549_v48 }
 0x314   : > { %948 = vrcp.f32 %v679_v50 }
 0x315   : > { %563 = vperm.xlu1 %929, %v945_v49  }
 0x319   : > { %v947_v51 = vpop.eup %946 }
 0x31a   : > { %v554_v52 = vsel %vm315_vm0, %v947_v51, 0.0  ;;  %v567_v53 = vpack.c.bf16 %v947_v51, %v947_v51  ;;  %v949_v54 = vpop.eup %948 }
 0x31b   : > { %555 = vadd.xlane.f32.xlu2 %v554_v52 }
 0x31c   : > { %879 = vmatmul.msk.bf16.vlgmr.msrb.gmra.mxu3 %vm315_vm0, %v567_v53 }
 0x333   : > { %684 = vperm.xlu2 %930, %v949_v54  }
 0x367   : > { %v469_v57 = vpop.xlane.xlu0 %468 }
 0x368   : > { %v470_v58 = vadd.f32 %v469_v57, %v466_v56 }
 0x36a   : > { %471 = vst.msk [vmem:[#allocation3 + $0x8] sm:$0xff] %vm306_vm1, %v470_v58 }
 0x36f   : > { %v640_v61 = vpop.xlane.xlu1 %639 }
 0x370   : > { %v641_v62 = vadd.f32 %v640_v61, %v637_v60 }
 0x371   : > { %v691_v63 = vld [vmem:[#allocation3 + $0x8] sm:$0xff] }
 0x372   : > { %642 = vst.msk [vmem:[#allocation3 + $0x18] sm:$0xff] %vm306_vm1, %v641_v62  ;;  %950 = vrcp.f32 %v691_v63 }
 0x378   : > { %v951_v3 = vpop.eup %950  ;;  %v501_v4 = vpop.f32.mrf.mxu3 }
 0x379   : > { %v505_v5 = vadd.f32 %v501_v4, %v479_v2  ;;  %696 = vperm.xlu0 %931, %v951_v3   ;;  %v723_v6 = vld [vmem:[#allocation3 + $0x18] sm:$0xff] }
 0x37a   : > { %952 = vrcp.f32 %v723_v6  ;;  %v648_v8 = vpop.permute.xlu0 %647 }
 0x37b   : > { %506 = vst.msk [vmem:[#allocation4 + $0x8] sm:$0xff] %vm315_vm0, %v505_v5  ;;  %v650_v9 = vmul.f32 %v648_v8, %v644_v7 }
 0x380   : > { %v953_v10 = vpop.eup %952  ;;  %v503_v11 = vpop.f32.mrf.mxu3 }
 0x381   : > { %v669_v12 = vpop.f32.mrf.mxu2  ;;  %728 = vperm.xlu0 %931, %v953_v10  }
 0x382   : > { %v673_v13 = vadd.f32 %v669_v12, %v650_v9  ;;  %v693_v31 = vld [vmem:[#allocation4 + $0x8] sm:$0xff] }
 0x384   : > { %674 = vst.msk [vmem:[#allocation4 + $0x18] sm:$0xff] %vm315_vm0, %v673_v13 }
 0x387   : > { %v564_v25 = vpop.permute.xlu1 %563 }
 0x388   : > { %v566_v26 = vmul.f32 %v564_v25, %v560_v24 }
 0x389   : > { %v671_v14 = vpop.f32.mrf.mxu2 }
 0x38b   : > { %v725_v35 = vld [vmem:[#allocation4 + $0x18] sm:$0xff] }
 0x38e   : > { %v556_v17 = vpop.xlane.xlu2 %555 }
 0x38f   : > { %v557_v18 = vadd.f32 %v556_v17, %v553_v16 }
 0x391   : > { %558 = vst.msk [vmem:[#allocation3 + $0x10] sm:$0xff] %vm306_vm1, %v557_v18 }
 0x396   : > { %v685_v20 = vpop.permute.xlu2 %684 }
 0x397   : > { %v687_v21 = vmul.f32 %v685_v20, %v681_v19 }
 0x398   : > { %v707_v22 = vld [vmem:[#allocation3 + $0x10] sm:$0xff] }
 0x399   : > { %v688_v23 = vpack.c.bf16 %v687_v21, %v687_v21  ;;  %954 = vrcp.f32 %v707_v22 }
 0x39b   : > { %690 = vst.msk [vmem:[%s1159_s20] sm:$0xf] %vm689_vm4, %v688_v23 }
 0x39f   : > { %v955_v27 = vpop.eup %954  ;;  %v585_v28 = vpop.f32.mrf.mxu3 }
 0x3a0   : > { %v589_v29 = vadd.f32 %v585_v28, %v566_v26  ;;  %712 = vperm.xlu1 %929, %v955_v27  }
 0x3a2   : > { %590 = vst.msk [vmem:[#allocation4 + $0x10] sm:$0xff] %vm315_vm0, %v589_v29 }
 0x3a7   : > { %v587_v30 = vpop.f32.mrf.mxu3 }
 0x3a9   : > { %v709_v39 = vld [vmem:[#allocation4 + $0x10] sm:$0xff] }
 0x3eb   : > { %v697_v32 = vpop.permute.xlu0 %696 }
 0x3ec   : > { %v699_v33 = vmul.f32 %v697_v32, %v693_v31 }
 0x3ee   : > { %v700_v34 = vpack.c.bf16 %v699_v33, %v699_v33 }
 0x3f0   : > { %702 = vrot.lane.b32.xlu1 %v700_v34, %s1006_s21 }
 0x3f3   : > { %v729_v36 = vpop.permute.xlu0 %728 }
 0x3f4   : > { %v731_v37 = vmul.f32 %v729_v36, %v725_v35 }
 0x3f6   : > { %v732_v38 = vpack.c.bf16 %v731_v37, %v731_v37 }
 0x3f8   : > { %734 = vrot.lane.b32.xlu0 %v732_v38, %s1007_s22 }
 0x412   : > { %v713_v40 = vpop.permute.xlu1 %712 }
 0x413   : > { %v715_v41 = vmul.f32 %v713_v40, %v709_v39 }
 0x415   : > { %v716_v42 = vpack.c.bf16 %v715_v41, %v715_v41 }
 0x417   : > { %718 = vrot.lane.b32.xlu2 %v716_v42, %s1008_s23 }
 0x462   : > { %v703_v43 = vpop.permute.xlu1 %702 }
 0x463   : > { %706 = vst.msk [vmem:[%s1159_s20] sm:$0xf] %vm705_vm5, %v703_v43 }
 0x46a   : > { %v735_v45 = vpop.permute.xlu0 %734 }
 0x471   : > { %v719_v44 = vpop.permute.xlu2 %718 }
 0x472   : > { %722 = vst.msk [vmem:[%s1159_s20] sm:$0xf] %vm721_vm6, %v719_v44 }
 0x473   : > { %738 = vst.msk [vmem:[%s1159_s20] sm:$0xf] %vm737_vm7, %v735_v45 }
 0x474 PF: > { %s15_s17 = sadd.s32 1, %s997_s17   ;;  %s1180_s15 = smov %s993_s16 }
 0x475   : > { %p12_p8 = scmp.ge.s32.totalorder %s15_s17, 4   ;;  %s1181_s16 = smov %s1183_s19 }
 0x477   :  { %14 = sbr.rel (!%p12_p8) target bundleno = 2 (0x2), region = 94 }
 0x47c   :  { %764 = vsyncpa [#allocation6], 1 }
 0x47d   :  { %766 = vsyncpa [#allocation6 + $0x1], 1 }

</bundles_post_ra>
